<compile_context>
chip_gen: v5e
topology: v5e:2x2
jax: 0.10.0
libtpu: 0.0.40
codegen_flags: <defaults>
</compile_context>

<pallas_src>
import jax
import jax.numpy as jnp
from jax import lax
from jax.experimental import pallas as pl
from jax.experimental.pallas import tpu as pltpu


def _round_up(x, m):
    return (x + m - 1) // m * m


def _nel_loss_ref(specific_tokens, general_tokens, targets):
    # Pure-JAX reference mirroring the PyTorch module (also the tiny-N path).
    g = general_tokens.astype(jnp.float32)
    s = specific_tokens.astype(jnp.float32)
    g_pow = jnp.sum(g * g, axis=1, keepdims=True)
    s_pow = jnp.sum(s * s, axis=1, keepdims=True)
    dist = g_pow + s_pow.T - 2.0 * (g @ s.T)
    dist = jnp.sqrt(jnp.maximum(dist, 1e-12))
    is_pos = (targets[:, None] == targets[None, :]).astype(jnp.float32)
    return -jnp.mean(jnp.mean(dist * is_pos, axis=1))


def _nel_kernel(flags_ref, g_ref, s_ref, gpow_ref, spow_ref, trow_ref, tcol_ref,
                out_ref, acc_ref):
    i = pl.program_id(0)
    j = pl.program_id(1)
    nj = pl.num_programs(1)

    # Zero the (tm, 128) lane-block accumulator at the first column tile.
    @pl.when(j == 0)
    def _():
        acc_ref[...] = jnp.zeros_like(acc_ref)

    # Skip tiles whose row/col label sets are disjoint (contribute exactly 0).
    @pl.when(flags_ref[i * nj + j] != 0)
    def _():
        # g @ s^T on the MXU: bf16 operands, f32 accumulation, no transpose.
        gs = lax.dot_general(
            g_ref[...], s_ref[...],
            dimension_numbers=(((1,), (1,)), ((), ())),
            preferred_element_type=jnp.float32,
        )                                                     # (tm, tn) f32

        # ||g_i||^2 (column) + ||s_j||^2 (row, lane-major) - 2 g.s, in f32.
        dist = gpow_ref[...] + spow_ref[...] - 2.0 * gs
        dist = jnp.sqrt(jnp.maximum(dist, 1e-12))

        # Positive-pair select: single VPU select, no f32 mask temporary.
        masked = jnp.where(trow_ref[...] == tcol_ref[...], dist, 0.0)

        # Fold the tn lanes into 128 lanes with static vreg-aligned VPU adds;
        # the expensive cross-lane (XLU) reduce is deferred to the last j.
        tn = masked.shape[1]
        part = masked[:, 0:128]
        for blk in range(1, tn // 128):
            part = part + masked[:, blk * 128:(blk + 1) * 128]
        acc_ref[...] += part

    # One cross-lane reduce per row tile, then write the (tm, 1) output block.
    @pl.when(j == nj - 1)
    def _():
        out_ref[...] = jnp.sum(acc_ref[...], axis=1, keepdims=True)


def nel_loss(specific_tokens, general_tokens, targets, *, tile_m=512, tile_n=256):
    """Pallas implementation of NEL(distance_mode='Euclidean').forward."""
    n, d = general_tokens.shape
    assert specific_tokens.shape == (n, d)

    # Tiny-N fast path: pallas_call fixed overhead dwarfs the compute.
    if n < 64:
        return _nel_loss_ref(specific_tokens, general_tokens, targets)

    # --- tile selection -----------------------------------------------------
    n16 = _round_up(n, 16)                    # bf16 operand sublane tile is 16
    if n16 <= 256:
        tm = n16                              # single row tile for small N
    else:
        # At least 2 row tiles so the "parallel" i axis feeds both v7x TCs.
        tm = min(tile_m, _round_up(-(-n16 // 2), 16))
    tn = min(tile_n, _round_up(n, 128))       # lane tile, multiple of 128

    nr = -(-n // tm) * tm                     # padded rows (general_tokens)
    nc = -(-n // tn) * tn                     # padded cols (specific_tokens)
    gi, gj = nr // tm, nc // tn

    # --- wrapper-side layout plumbing (no D padding, bf16 operands) ---------
    def pad_rows(x, rows):
        r = x.shape[0]
        return x if r == rows else jnp.pad(x, ((0, rows - r), (0, 0)))

    g = pad_rows(general_tokens, nr).astype(jnp.bfloat16)     # (nr, d) bf16
    s = pad_rows(specific_tokens, nc).astype(jnp.bfloat16)    # (nc, d) bf16

    # Squared norms in f32 (from the original inputs), already oriented
    # (nr, 1) / (1, nc) so the kernel never transposes.
    g32 = general_tokens.astype(jnp.float32)
    s32 = specific_tokens.astype(jnp.float32)
    g_pow = pad_rows(jnp.sum(g32 * g32, axis=1, keepdims=True), nr)            # (nr, 1)
    s_pow = pad_rows(jnp.sum(s32 * s32, axis=1, keepdims=True), nc).reshape(1, nc)

    # Targets with collision-free padding sentinels (outside observed range).
    tgt = targets.astype(jnp.int32).reshape(n)
    sent = jnp.max(tgt)
    t_row = jnp.concatenate(
        [tgt, jnp.full((nr - n,), sent + 1, jnp.int32)]).reshape(nr, 1)
    t_col = jnp.concatenate(
        [tgt, jnp.full((nc - n,), sent + 2, jnp.int32)]).reshape(1, nc)

    # Per-tile "has any positive pair" flags (scalar-prefetched into SMEM).
    # Cheap O(N^2) int8 pass; lets the kernel skip label-disjoint tiles.
    eq = t_row.reshape(nr, 1) == t_col.reshape(1, nc)
    flags = eq.reshape(gi, tm, gj, tn).any(axis=(1, 3)).astype(jnp.int32).reshape(gi * gj)

    grid = (gi, gj)

    row_sums = pl.pallas_call(
        _nel_kernel,
        out_shape=jax.ShapeDtypeStruct((nr, 1), jnp.float32),
        grid_spec=pltpu.PrefetchScalarGridSpec(
            num_scalar_prefetch=1,
            grid=grid,
            in_specs=[
                pl.BlockSpec((tm, d), lambda i, j, f: (i, 0)),   # general tile (bf16)
                pl.BlockSpec((tn, d), lambda i, j, f: (j, 0)),   # specific tile (bf16)
                pl.BlockSpec((tm, 1), lambda i, j, f: (i, 0)),   # ||g||^2 column
                pl.BlockSpec((1, tn), lambda i, j, f: (0, j)),   # ||s||^2 row
                pl.BlockSpec((tm, 1), lambda i, j, f: (i, 0)),   # row targets
                pl.BlockSpec((1, tn), lambda i, j, f: (0, j)),   # col targets
            ],
            out_specs=pl.BlockSpec((tm, 1), lambda i, j, f: (i, 0)),
            scratch_shapes=[pltpu.VMEM((tm, 128), jnp.float32)],
        ),
        compiler_params=pltpu.CompilerParams(
            dimension_semantics=("parallel", "arbitrary"),
            vmem_limit_bytes=32 * 1024 * 1024,   # safe on v7x's 64 MiB VMEM
        ),
    )(flags, g, s, g_pow, s_pow, t_row, t_col)

    # Fused double mean: -sum(dist * is_pos) / (N*N). Padded rows/cols are 0.
    return -jnp.sum(row_sums) * (1.0 / float(n * n))


if __name__ == "__main__":
    key = jax.random.PRNGKey(0)
    k1, k2, k3 = jax.random.split(key, 3)

    # Case 1: the module's typical tiny token batch -> pure-JAX fast path.
    N, D = 8, 32
    specific_tokens = jax.random.normal(k1, (N, D), dtype=jnp.float32)
    general_tokens = jax.random.normal(k2, (N, D), dtype=jnp.float32)
    targets = jax.random.randint(k3, (N,), 0, 3, dtype=jnp.int32)
    loss = jax.block_until_ready(nel_loss(specific_tokens, general_tokens, targets))
    ref = _nel_loss_ref(specific_tokens, general_tokens, targets)
    assert jnp.allclose(loss, ref, atol=1e-2, rtol=1e-2), (loss, ref)

    # Case 2: Pallas path with a (2, 2) grid, row/col padding, unpadded D=48,
    # and sorted labels so some tiles are label-disjoint (flag-skip path).
    k4, k5, k6 = jax.random.split(jax.random.PRNGKey(1), 3)
    N2, D2 = 300, 48
    sp2 = jax.random.normal(k4, (N2, D2), dtype=jnp.float32)
    ge2 = jax.random.normal(k5, (N2, D2), dtype=jnp.float32)
    tg2 = jnp.sort(jax.random.randint(k6, (N2,), 0, 10, dtype=jnp.int32))
    loss2 = jax.block_until_ready(nel_loss(sp2, ge2, tg2))
    ref2 = _nel_loss_ref(sp2, ge2, tg2)
    # Tolerance covers bf16 MXU operands vs the f32 XLA reference.
    assert jnp.allclose(loss2, ref2, atol=1e-2, rtol=1e-2), (loss2, ref2)

    # Case 3: Pallas path, single-tile grid (1, 1), D=32 (not a lane multiple).
    k7, k8, k9 = jax.random.split(jax.random.PRNGKey(2), 3)
    N3, D3 = 128, 32
    sp3 = jax.random.normal(k7, (N3, D3), dtype=jnp.float32)
    ge3 = jax.random.normal(k8, (N3, D3), dtype=jnp.float32)
    tg3 = jax.random.randint(k9, (N3,), 0, 4, dtype=jnp.int32)
    loss3 = jax.block_until_ready(nel_loss(sp3, ge3, tg3))
    ref3 = _nel_loss_ref(sp3, ge3, tg3)
    assert jnp.allclose(loss3, ref3, atol=1e-2, rtol=1e-2), (loss3, ref3)

    print("KERNEL_OK")
</pallas_src>

<mosaic_0001>
module attributes {stable_mosaic.version = 11 : i64} {
  func.func @_nel_kernel(%arg0: i32, %arg1: i32, %arg2: memref<4xi32, #tpu.memory_space<smem>>, %arg3: memref<160x48xbf16, #tpu.memory_space<vmem>>, %arg4: memref<256x48xbf16, #tpu.memory_space<vmem>>, %arg5: memref<160x1xf32, #tpu.memory_space<vmem>>, %arg6: memref<1x256xf32, #tpu.memory_space<vmem>>, %arg7: memref<160x1xi32, #tpu.memory_space<vmem>>, %arg8: memref<1x256xi32, #tpu.memory_space<vmem>>, %arg9: memref<160x1xf32, #tpu.memory_space<vmem>>, %arg10: memref<160x128xf32, #tpu.memory_space<vmem>>) attributes {dimension_semantics = [#tpu.dimension_semantics<parallel>, #tpu.dimension_semantics<arbitrary>], iteration_bounds = array<i64: 2, 2>, scalar_prefetch = 1 : i64, scratch_operands = 1 : i64, tpu.core_type = #tpu.core_type<tc>, window_params = [{transform_indices = @transform_0, window_bounds = array<i64: 160, 48>}, {transform_indices = @transform_1, window_bounds = array<i64: 256, 48>}, {transform_indices = @transform_2, window_bounds = array<i64: 160, 1>}, {transform_indices = @transform_3, window_bounds = array<i64: 1, 256>}, {transform_indices = @transform_4, window_bounds = array<i64: 160, 1>}, {transform_indices = @transform_5, window_bounds = array<i64: 1, 256>}, {transform_indices = @transform_6, window_bounds = array<i64: 160, 1>}]} {
    %c0_i32 = arith.constant 0 : i32
    %0 = arith.cmpi eq, %arg1, %c0_i32 : i32
    %1 = arith.extui %0 : i1 to i32
    %c0_i32_0 = arith.constant 0 : i32
    %2 = arith.cmpi ne, %1, %c0_i32_0 : i32
    scf.if %2 {
      %cst = arith.constant 0.000000e+00 : f32
      %13 = vector.broadcast %cst : f32 to vector<160x128xf32>
      %c0 = arith.constant 0 : index
      %c0_4 = arith.constant 0 : index
      %14 = vector.load %arg10[%c0, %c0_4] : memref<160x128xf32, #tpu.memory_space<vmem>>, vector<160x128xf32>
      tpu.vector_store %arg10[%c0, %c0_4], %13 {strides = array<i32>} : memref<160x128xf32, #tpu.memory_space<vmem>>, vector<160x128xf32>,
    } else {
    }
    %c2_i32 = arith.constant 2 : i32
    %3 = arith.muli %arg0, %c2_i32 : i32
    %4 = arith.addi %3, %arg1 : i32
    %5 = arith.index_cast %4 : i32 to index
    %6 = memref.load %arg2[%5] : memref<4xi32, #tpu.memory_space<smem>>
    %c0_i32_1 = arith.constant 0 : i32
    %7 = arith.cmpi ne, %6, %c0_i32_1 : i32
    %8 = arith.extui %7 : i1 to i32
    %c0_i32_2 = arith.constant 0 : i32
    %9 = arith.cmpi ne, %8, %c0_i32_2 : i32
    scf.if %9 {
      %c0 = arith.constant 0 : index
      %c0_4 = arith.constant 0 : index
      %13 = vector.load %arg3[%c0, %c0_4] : memref<160x48xbf16, #tpu.memory_space<vmem>>, vector<160x48xbf16>
      %c0_5 = arith.constant 0 : index
      %c0_6 = arith.constant 0 : index
      %14 = vector.load %arg4[%c0_5, %c0_6] : memref<256x48xbf16, #tpu.memory_space<vmem>>, vector<256x48xbf16>
      %cst = arith.constant dense<0.000000e+00> : vector<160x256xf32>
      %15 = tpu.matmul %13, %14, %cst {dimension_numbers = #tpu.dot_dimension_numbers<[1], [1], [0], [0], [0, 0, 1, 0], [], []>} : vector<160x48xbf16>, vector<256x48xbf16>, vector<160x256xf32> -> vector<160x256xf32>
      %c0_7 = arith.constant 0 : index
      %c0_8 = arith.constant 0 : index
      %16 = vector.load %arg5[%c0_7, %c0_8] : memref<160x1xf32, #tpu.memory_space<vmem>>, vector<160x1xf32>
      %c0_9 = arith.constant 0 : index
      %c0_10 = arith.constant 0 : index
      %17 = vector.load %arg6[%c0_9, %c0_10] : memref<1x256xf32, #tpu.memory_space<vmem>>, vector<1x256xf32>
      %18 = vector.broadcast %16 : vector<160x1xf32> to vector<160x256xf32>
      %19 = vector.broadcast %17 : vector<1x256xf32> to vector<160x256xf32>
      %20 = arith.addf %18, %19 : vector<160x256xf32>
      %cst_11 = arith.constant 2.000000e+00 : f32
      %21 = vector.broadcast %cst_11 : f32 to vector<160x256xf32>
      %22 = arith.mulf %21, %15 : vector<160x256xf32>
      %23 = arith.subf %20, %22 : vector<160x256xf32>
      %cst_12 = arith.constant 9.99999996E-13 : f32
      %24 = vector.broadcast %cst_12 : f32 to vector<160x256xf32>
      %25 = arith.maximumf %23, %24 : vector<160x256xf32>
      %26 = math.sqrt %25 : vector<160x256xf32>
      %c0_13 = arith.constant 0 : index
      %c0_14 = arith.constant 0 : index
      %27 = vector.load %arg7[%c0_13, %c0_14] : memref<160x1xi32, #tpu.memory_space<vmem>>, vector<160x1xi32>
      %c0_15 = arith.constant 0 : index
      %c0_16 = arith.constant 0 : index
      %28 = vector.load %arg8[%c0_15, %c0_16] : memref<1x256xi32, #tpu.memory_space<vmem>>, vector<1x256xi32>
      %29 = vector.broadcast %27 : vector<160x1xi32> to vector<160x256xi32>
      %30 = vector.broadcast %28 : vector<1x256xi32> to vector<160x256xi32>
      %31 = arith.cmpi eq, %29, %30 : vector<160x256xi32>
      %cst_17 = arith.constant 0.000000e+00 : f32
      %32 = vector.broadcast %cst_17 : f32 to vector<160x256xf32>
      %33 = arith.select %31, %26, %32 : vector<160x256xi1>, vector<160x256xf32>
      %34 = vector.extract_strided_slice %33 {offsets = [0, 0], sizes = [160, 128], strides = [1, 1]} : vector<160x256xf32> to vector<160x128xf32>
      %35 = vector.extract_strided_slice %33 {offsets = [0, 128], sizes = [160, 128], strides = [1, 1]} : vector<160x256xf32> to vector<160x128xf32>
      %36 = arith.addf %34, %35 : vector<160x128xf32>
      %c0_18 = arith.constant 0 : index
      %c0_19 = arith.constant 0 : index
      %37 = vector.load %arg10[%c0_18, %c0_19] : memref<160x128xf32, #tpu.memory_space<vmem>>, vector<160x128xf32>
      %38 = arith.addf %37, %36 : vector<160x128xf32>
      %c0_20 = arith.constant 0 : index
      %c0_21 = arith.constant 0 : index
      %39 = vector.load %arg10[%c0_20, %c0_21] : memref<160x128xf32, #tpu.memory_space<vmem>>, vector<160x128xf32>
      tpu.vector_store %arg10[%c0_20, %c0_21], %38 {strides = array<i32>} : memref<160x128xf32, #tpu.memory_space<vmem>>, vector<160x128xf32>,
    } else {
    }
    %c1_i32 = arith.constant 1 : i32
    %10 = arith.cmpi eq, %arg1, %c1_i32 : i32
    %11 = arith.extui %10 : i1 to i32
    %c0_i32_3 = arith.constant 0 : i32
    %12 = arith.cmpi ne, %11, %c0_i32_3 : i32
    scf.if %12 {
      %c0 = arith.constant 0 : index
      %c0_4 = arith.constant 0 : index
      %13 = vector.load %arg10[%c0, %c0_4] : memref<160x128xf32, #tpu.memory_space<vmem>>, vector<160x128xf32>
      %cst = arith.constant dense<0.000000e+00> : vector<160xf32>
      %14 = vector.multi_reduction <add>, %13, %cst [1] : vector<160x128xf32> to vector<160xf32>
      %15 = vector.shape_cast %14 : vector<160xf32> to vector<160x1xf32>
      %c0_5 = arith.constant 0 : index
      %c0_6 = arith.constant 0 : index
      %16 = vector.load %arg9[%c0_5, %c0_6] : memref<160x1xf32, #tpu.memory_space<vmem>>, vector<160x1xf32>
      tpu.vector_store %arg9[%c0_5, %c0_6], %15 {strides = array<i32>} : memref<160x1xf32, #tpu.memory_space<vmem>>, vector<160x1xf32>,
    } else {
    }
    return
  }
  func.func @transform_0(%arg0: i32, %arg1: i32, %arg2: memref<4xi32, #tpu.memory_space<smem>>) -> (i32, i32) {
    %c0_i32 = arith.constant 0 : i32
    %c0_i32_0 = arith.constant 0 : i32
    return %arg0, %c0_i32 : i32, i32
  }
  func.func @transform_1(%arg0: i32, %arg1: i32, %arg2: memref<4xi32, #tpu.memory_space<smem>>) -> (i32, i32) {
    %c0_i32 = arith.constant 0 : i32
    %c0_i32_0 = arith.constant 0 : i32
    return %arg1, %c0_i32 : i32, i32
  }
  func.func @transform_2(%arg0: i32, %arg1: i32, %arg2: memref<4xi32, #tpu.memory_space<smem>>) -> (i32, i32) {
    %c0_i32 = arith.constant 0 : i32
    %c0_i32_0 = arith.constant 0 : i32
    return %arg0, %c0_i32 : i32, i32
  }
  func.func @transform_3(%arg0: i32, %arg1: i32, %arg2: memref<4xi32, #tpu.memory_space<smem>>) -> (i32, i32) {
    %c0_i32 = arith.constant 0 : i32
    %c0_i32_0 = arith.constant 0 : i32
    return %c0_i32, %arg1 : i32, i32
  }
  func.func @transform_4(%arg0: i32, %arg1: i32, %arg2: memref<4xi32, #tpu.memory_space<smem>>) -> (i32, i32) {
    %c0_i32 = arith.constant 0 : i32
    %c0_i32_0 = arith.constant 0 : i32
    return %arg0, %c0_i32 : i32, i32
  }
  func.func @transform_5(%arg0: i32, %arg1: i32, %arg2: memref<4xi32, #tpu.memory_space<smem>>) -> (i32, i32) {
    %c0_i32 = arith.constant 0 : i32
    %c0_i32_0 = arith.constant 0 : i32
    return %c0_i32, %arg1 : i32, i32
  }
  func.func @transform_6(%arg0: i32, %arg1: i32, %arg2: memref<4xi32, #tpu.memory_space<smem>>) -> (i32, i32) {
    %c0_i32 = arith.constant 0 : i32
    %c0_i32_0 = arith.constant 0 : i32
    return %arg0, %c0_i32 : i32, i32
  }
}

</mosaic_0001>

<bundles_post_ra>
// kernel: tpu_custom_call.1
= control target key start
LH: loop header
LB: loop body
LE: loop exit
PB: predicated region body
PF: predicated region fallthrough
CT: control target
= control target key end

     0   :  { %s2371_s27 = smov [#allocation4]   ;;  %s3511_s0 = inlined_call_operand.vmem [shape: s32[4], index: 0, kind: input, shape index: {}]   ;;  %s3512_s1 = inlined_call_operand.vmem [shape: bf16[320,48], index: 1, kind: input, shape index: {}]   ;;  %s3513_s2 = inlined_call_operand.vmem [shape: bf16[512,48], index: 2, kind: input, shape index: {}]   ;;  %s3514_s3 = inlined_call_operand.vmem [shape: f32[320,1], index: 3, kind: input, shape index: {}]   ;;  %s3515_s4 = inlined_call_operand.vmem [shape: f32[1,512], index: 4, kind: input, shape index: {}]   ;;  %s3516_s5 = inlined_call_operand.vmem [shape: s32[320,1], index: 5, kind: input, shape index: {}]   ;;  %s3517_s6 = inlined_call_operand.vmem [shape: s32[1,512], index: 6, kind: input, shape index: {}]   ;;  %s3518_s7 = inlined_call_operand.vmem [shape: f32[320,1], index: 7, kind: output, shape index: {}]  }
   0x1   :  { %s13_s26 = sshll.u32 %s3511_s0, 4  ;;  %s14_s26 = int_to_ptr.vmem [resolvable:$true] %s13_s26 }
   0x2   :  { %16 = dma.vmem_to_smem %s14_s26, 16, %s2371_s27, [#allocation3] }
   0x3   :  { %2349 = dma.done.wait [#allocation3], 16 }
   0x4   :  { %2350 = vsyncadd [#allocation3], 4294967280 }
   0x5   :  { %19 = sfence }
   0x6   :  { %s2417_s28 = smov 0   ;;  %s2419_s29 = smov 0  }
   0x7   :  { %s2421_s30 = smov 0   ;;  %s2423_s8 = smov 0  }
   0x8   :  { %s2425_s9 = smov 0  }
   0x9 LB: > { %s34_s0 = sadd.s32 1, %s2361_s30  ;;  %s37_s10 = sadd.s32 1, %s2365_s8  ;;  %s2369_s9 = sphi %s2425_s9, %s25_s9   ;;  %s2365_s8 = sphi %s2423_s8, %s3533_s8   ;;  %s2361_s30 = sphi %s2421_s30, %s3532_s30   ;;  %s2357_s29 = sphi %s2419_s29, %s3531_s29   ;;  %s2353_s28 = sphi %s2417_s28, %s3530_s28  }
   0xa   : > { %p35_p0 = scmp.ge.s32.totalorder %s34_s0, 2  ;;  %p2010_p1 = scmp.ge.s32.totalorder %s2369_s9, 1 }
   0xb   : > { %p287_p2 = scmp.lt.s32.totalorder %s2369_s9, 5 }
   0xc   : > { %s3535_s0 = smov (%p35_p0, %s34_s0), 0  ;;  %s3537_s10 = smov (!%p35_p0, %s37_s10), %s2365_s8 }
   0xd   : > { %p288_p3 = pnand %p2010_p1, %p287_p2  ;;  %p39_p4 = scmp.ge.s32.totalorder %s3537_s10, 2 }
   0xe   : > { %s340_s11 = smul.u32 (!%p288_p3), 20, %s2357_s29  ;;  %s2012_s12 = sshll.u32 (!%p288_p3), %s2353_s28, 5 }
   0xf   : > { %s3539_s10 = smov (%p39_p4, %s3537_s10), 0  ;;  %291 = sbr.rel (%p288_p3) target bundleno = 635 (0x27b), region = 44 }
  0x10   : > { %p347_p5 = scmp.lt.s32.totalorder (!%p288_p3), %s2012_s12, 63  ;;  %p341_p6 = scmp.lt.s32.totalorder (!%p288_p3), %s340_s11, 39 }
  0x11   : > { %s2015_s13 = sshll.u32 (!%p288_p3), %s2353_s28, 1  ;;  %p2019_p8 = scmp.ne.s32.totalorder (!%p288_p3), %s2353_s28, 0 }
  0x12   : > { %p359_p7 = scmp.lt.s32.totalorder (!%p288_p3), %s2015_s13, 3 }
  0x14   : > { %s3541_s12 = smov (!%p347_p5, %s2012_s12), 63  ;;  %s3543_s11 = smov (!%p341_p6, %s340_s11), 39 }
  0x15   : > { %s2013_s14 = sshll.u32 %s3541_s12, 2  ;;  %s2011_s15 = sshll.u32 %s3543_s11, 2 }
  0x16   : > { %s2457_s18 = scalar_lea.vmem %s3513_s2, %s2013_s14  ;;  %s2462_s21 = scalar_lea.vmem %s3512_s1, %s2011_s15 }
  0x17   : > { %s2014_s22 = sshll.u32 %s3543_s11, 3  ;;  %s3545_s13 = smov (!%p359_p7, %s2015_s13), 3 }
  0x18   : > { %s2467_s25 = scalar_lea.vmem %s3514_s3, %s2014_s22  ;;  %s2472_s12 = scalar_lea.vmem %s3516_s5, %s2014_s22 }
  0x19   : > { %s2479_s15 = scalar_lea.vmem %s3518_s7, %s2014_s22  ;;  %s361_s19 = scalar_lea.vmem %s3515_s4, %s3545_s13 }
  0x1a   : > { %s372_s24 = scalar_lea.vmem %s3517_s6, %s3545_s13  ;;  %383 = sbr.rel (%p2019_p8) target bundleno = 52 (0x34), region = 48 }
  0x1f   : > { %v2372_v0 = vmov 0.0  }
  0x20   : > { %384 = vst [vmem:[#allocation2] sm:$0xff] %v2372_v0 }
  0x21   : > { %385 = vst [vmem:[#allocation2 + $0x38] sm:$0xff] %v2372_v0 }
  0x22   : > { %386 = vst [vmem:[#allocation2 + $0x50] sm:$0xff] %v2372_v0 }
  0x23   : > { %387 = vst [vmem:[#allocation2 + $0x18] sm:$0xff] %v2372_v0 }
  0x24   : > { %388 = vst [vmem:[#allocation2 + $0x30] sm:$0xff] %v2372_v0 }
  0x25   : > { %389 = vst [vmem:[#allocation2 + $0x68] sm:$0xff] %v2372_v0 }
  0x26   : > { %390 = vst [vmem:[#allocation2 + $0x78] sm:$0xff] %v2372_v0 }
  0x27   : > { %391 = vst [vmem:[#allocation2 + $0x80] sm:$0xff] %v2372_v0 }
  0x28   : > { %392 = vst [vmem:[#allocation2 + $0x8] sm:$0xff] %v2372_v0 }
  0x29   : > { %393 = vst [vmem:[#allocation2 + $0x88] sm:$0xff] %v2372_v0 }
  0x2a   : > { %394 = vst [vmem:[#allocation2 + $0x28] sm:$0xff] %v2372_v0 }
  0x2b   : > { %395 = vst [vmem:[#allocation2 + $0x40] sm:$0xff] %v2372_v0 }
  0x2c   : > { %396 = vst [vmem:[#allocation2 + $0x58] sm:$0xff] %v2372_v0 }
  0x2d   : > { %397 = vst [vmem:[#allocation2 + $0x10] sm:$0xff] %v2372_v0 }
  0x2e   : > { %398 = vst [vmem:[#allocation2 + $0x98] sm:$0xff] %v2372_v0 }
  0x2f   : > { %399 = vst [vmem:[#allocation2 + $0x60] sm:$0xff] %v2372_v0 }
  0x30   : > { %400 = vst [vmem:[#allocation2 + $0x20] sm:$0xff] %v2372_v0 }
  0x31   : > { %401 = vst [vmem:[#allocation2 + $0x48] sm:$0xff] %v2372_v0 }
  0x32   : > { %402 = vst [vmem:[#allocation2 + $0x70] sm:$0xff] %v2372_v0 }
  0x33   : > { %403 = vst [vmem:[#allocation2 + $0x90] sm:$0xff] %v2372_v0 }
  0x34 PF: > { %s2020_s22 = sshll.u32 %s2357_s29, 1 }
  0x35   : > { %s405_s26 = sadd.s32 %s2353_s28, %s2020_s22 }
  0x36   : > { %s406_s27 = sld [smem:[#allocation4 + %s405_s26]] }
  0x3c   : > { %p2021_p9 = scmp.eq.s32.totalorder %s406_s27, 0 }
  0x3e   : > { %410 = sbr.rel (%p2021_p9) target bundleno = 461 (0x1cd), region = 52 }
  0x43   : > { %v792_v1 = vld [vmem:[%s2467_s25 + $0x10] sm:$0xff]  ;;  %v790_v2 = vld [vmem:[%s2467_s25] sm:$0xff]  ;;  %v2166_v3 = vld [vmem:[%s2457_s18 + $0x38] sm:$0xff]  ;;  %vm593_vm0 = vcmask 392192   ;;  %v2373_v4 = vmov 0  }
  0x44   : > { %2235 = vset.pattern.permute.xlu1 %v2373_v4  ;;  %2234 = vset.pattern.permute.xlu0 %v2373_v4  ;;  %v2174_v5 = vld [vmem:[%s2457_s18 + $0x78] sm:$0xff]  ;;  %v646_v6 = vsel %vm593_vm0, %v2166_v3, 0  ;;  %v794_v8 = vld [vmem:[%s2467_s25 + $0x20] sm:$0xff]  ;;  %v2165_v9 = vld [vmem:[%s2457_s18 + $0x30] sm:$0xff] }
  0x45   : > { %823 = vperm.xlu1 %2235, %v792_v1   ;;  %813 = vperm.xlu0 %2234, %v790_v2   ;;  %v670_v7 = vsel %vm593_vm0, %v2174_v5, 0  ;;  %v2173_v10 = vld [vmem:[%s2457_s18 + $0x70] sm:$0xff]  ;;  %v793_v11 = vld [vmem:[%s2467_s25 + $0x18] sm:$0xff]  ;;  %v791_v12 = vld [vmem:[%s2467_s25 + $0x8] sm:$0xff]  ;;  %v643_v13 = vsel %vm593_vm0, %v2165_v9, 0 }
  0x46   : > { %672 = vmatpush.bf16.xpose.msra.mxu0 %v646_v6  ;;  %2175 = vmatpush.bf16.xpose.msra.mxu2 %v646_v6  ;;  %v667_v14 = vsel %vm593_vm0, %v2173_v10, 0  ;;  %v795_v15 = vld [vmem:[%s2467_s25 + $0x28] sm:$0xff]  ;;  %v797_v18 = vld [vmem:[%s2467_s25 + $0x38] sm:$0xff]  ;;  %v796_v19 = vld [vmem:[%s2467_s25 + $0x30] sm:$0xff] }
  0x47   : > { %731 = vmatpush.bf16.xpose.msra.mxu1 %v670_v7  ;;  %2183 = vmatpush.bf16.xpose.msra.mxu3 %v670_v7  ;;  %v2164_v16 = vld [vmem:[%s2457_s18 + $0x28] sm:$0xff]  ;;  %v798_v22 = vld [vmem:[%s2467_s25 + $0x40] sm:$0xff]  ;;  %v800_v25 = vld [vmem:[%s2467_s25 + $0x50] sm:$0xff] }
  0x48   : > { %2236 = vset.pattern.permute.xlu2 %v2373_v4  ;;  %v2172_v17 = vld [vmem:[%s2457_s18 + $0x68] sm:$0xff]  ;;  %v640_v20 = vsel %vm593_vm0, %v2164_v16, 0  ;;  %v2163_v23 = vld [vmem:[%s2457_s18 + $0x20] sm:$0xff]  ;;  %v801_v29 = vld [vmem:[%s2467_s25 + $0x58] sm:$0xff] }
  0x49   : > { %833 = vperm.xlu2 %2236, %v794_v8   ;;  %v664_v21 = vsel %vm593_vm0, %v2172_v17, 0  ;;  %v2171_v24 = vld [vmem:[%s2457_s18 + $0x60] sm:$0xff]  ;;  %v799_v26 = vld [vmem:[%s2467_s25 + $0x48] sm:$0xff]  ;;  %v637_v27 = vsel %vm593_vm0, %v2163_v23, 0  ;;  %v2162_v30 = vld [vmem:[%s2457_s18 + $0x18] sm:$0xff] }
  0x4a   : > { %v661_v28 = vsel %vm593_vm0, %v2171_v24, 0  ;;  %v2170_v31 = vld [vmem:[%s2457_s18 + $0x58] sm:$0xff]  ;;  %v803_v32 = vld [vmem:[%s2467_s25 + $0x68] sm:$0xff]  ;;  %v802_v33 = vld [vmem:[%s2467_s25 + $0x60] sm:$0xff]  ;;  %v634_v34 = vsel %vm593_vm0, %v2162_v30, 0 }
  0x4b   : > { %v658_v35 = vsel %vm593_vm0, %v2170_v31, 0  ;;  %v804_v36 = vld [vmem:[%s2467_s25 + $0x70] sm:$0xff]  ;;  %v806_v39 = vld [vmem:[%s2467_s25 + $0x80] sm:$0xff]  ;;  %v805_v40 = vld [vmem:[%s2467_s25 + $0x78] sm:$0xff] }
  0x4c   : > { %v2161_v37 = vld [vmem:[%s2457_s18 + $0x10] sm:$0xff]  ;;  %v807_v43 = vld [vmem:[%s2467_s25 + $0x88] sm:$0xff]  ;;  %v809_v46 = vld [vmem:[%s2467_s25 + $0x98] sm:$0xff] }
  0x4d   : > { %828 = vperm.xlu1 %2235, %v793_v11   ;;  %818 = vperm.xlu0 %2234, %v791_v12   ;;  %v2169_v38 = vld [vmem:[%s2457_s18 + $0x50] sm:$0xff]  ;;  %v631_v41 = vsel %vm593_vm0, %v2161_v37, 0  ;;  %v2160_v44 = vld [vmem:[%s2457_s18 + $0x8] sm:$0xff]  ;;  %v1556_v50 = vld [vmem:[%s2472_s12] sm:$0xff] }
  0x4e   : > { %673 = vmatpush.bf16.xpose.msra.mxu0 %v643_v13  ;;  %2176 = vmatpush.bf16.xpose.msra.mxu2 %v643_v13  ;;  %v655_v42 = vsel %vm593_vm0, %v2169_v38, 0  ;;  %v2168_v45 = vld [vmem:[%s2457_s18 + $0x48] sm:$0xff]  ;;  %v808_v47 = vld [vmem:[%s2467_s25 + $0x90] sm:$0xff]  ;;  %v628_v48 = vsel %vm593_vm0, %v2160_v44, 0  ;;  %v2159_v51 = vld [vmem:[%s2457_s18] sm:$0xff] }
  0x4f   : > { %732 = vmatpush.bf16.xpose.msra.mxu1 %v667_v14  ;;  %2184 = vmatpush.bf16.xpose.msra.mxu3 %v667_v14  ;;  %v652_v49 = vsel %vm593_vm0, %v2168_v45, 0  ;;  %v2167_v52 = vld [vmem:[%s2457_s18 + $0x40] sm:$0xff]  ;;  %v1558_v53 = vld [vmem:[%s2472_s12 + $0x10] sm:$0xff]  ;;  %v1557_v54 = vld [vmem:[%s2472_s12 + $0x8] sm:$0xff]  ;;  %v625_v55 = vsel %vm593_vm0, %v2159_v51, 0 }
  0x50   : > { %v649_v56 = vsel %vm593_vm0, %v2167_v52, 0  ;;  %v1559_v57 = vld [vmem:[%s2472_s12 + $0x18] sm:$0xff]  ;;  %v1561_v58 = vld [vmem:[%s2472_s12 + $0x28] sm:$0xff]  ;;  %v1560_v59 = vld [vmem:[%s2472_s12 + $0x20] sm:$0xff] }
  0x51   : > { %838 = vperm.xlu2 %2236, %v795_v15   ;;  %v2149_v60 = vld [vmem:[%s2462_s21] sm:$0xff]  ;;  %v2154_v61 = vld [vmem:[%s2462_s21 + $0x28] sm:$0xff]  ;;  %v1562_v62 = vld [vmem:[%s2472_s12 + $0x30] sm:$0xff] }
  0x52   : > { %v1564_v63 = vld [vmem:[%s2472_s12 + $0x40] sm:$0xff]  ;;  %v1563_v0 = vld [vmem:[%s2472_s12 + $0x38] sm:$0xff]  ;;  %v1565_v1 = vld [vmem:[%s2472_s12 + $0x48] sm:$0xff] }
  0x53   : > { %v1567_v2 = vld [vmem:[%s2472_s12 + $0x58] sm:$0xff]  ;;  %v1566_v3 = vld [vmem:[%s2472_s12 + $0x50] sm:$0xff]  ;;  %v2150_v4 = vld [vmem:[%s2462_s21 + $0x8] sm:$0xff] }
  0x54   : > { %v2155_v5 = vld [vmem:[%s2462_s21 + $0x30] sm:$0xff]  ;;  %v1568_v6 = vld [vmem:[%s2472_s12 + $0x60] sm:$0xff]  ;;  %v1569_v8 = vld [vmem:[%s2472_s12 + $0x68] sm:$0xff] }
  0x55   : > { %848 = vperm.xlu1 %2235, %v797_v18   ;;  %843 = vperm.xlu0 %2234, %v796_v19   ;;  %v1570_v7 = vld [vmem:[%s2472_s12 + $0x70] sm:$0xff]  ;;  %v1571_v9 = vld [vmem:[%s2472_s12 + $0x78] sm:$0xff]  ;;  %v1573_v10 = vld [vmem:[%s2472_s12 + $0x88] sm:$0xff] }
  0x56   : > { %674 = vmatpush.bf16.xpose.msra.mxu0 %v640_v20  ;;  %2177 = vmatpush.bf16.xpose.msra.mxu2 %v640_v20  ;;  %v1572_v11 = vld [vmem:[%s2472_s12 + $0x80] sm:$0xff]  ;;  %v2151_v12 = vld [vmem:[%s2462_s21 + $0x10] sm:$0xff]  ;;  %v2156_v13 = vld [vmem:[%s2462_s21 + $0x38] sm:$0xff] }
  0x57   : > { %733 = vmatpush.bf16.xpose.msra.mxu1 %v664_v21  ;;  %2185 = vmatpush.bf16.xpose.msra.mxu3 %v664_v21  ;;  %v1574_v14 = vld [vmem:[%s2472_s12 + $0x90] sm:$0xff]  ;;  %v1575_v15 = vld [vmem:[%s2472_s12 + $0x98] sm:$0xff]  ;;  %v2157_v17 = vld [vmem:[%s2462_s21 + $0x40] sm:$0xff] }
  0x58   : > { %v2152_v16 = vld [vmem:[%s2462_s21 + $0x18] sm:$0xff]  ;;  %v2153_v20 = vld [vmem:[%s2462_s21 + $0x20] sm:$0xff]  ;;  %v2158_v21 = vld [vmem:[%s2462_s21 + $0x48] sm:$0xff] }
  0x59   : > { %853 = vperm.xlu2 %2236, %v798_v22   ;;  %v810_v37 = vld [vmem:[%s361_s19] sm:$0x3] }
  0x5d   : > { %863 = vperm.xlu1 %2235, %v800_v25   ;;  %858 = vperm.xlu0 %2234, %v799_v26  }
  0x5e   : > { %675 = vmatpush.bf16.xpose.msra.mxu0 %v637_v27  ;;  %2178 = vmatpush.bf16.xpose.msra.mxu2 %v637_v27 }
  0x5f   : > { %734 = vmatpush.bf16.xpose.msra.mxu1 %v661_v28  ;;  %2186 = vmatpush.bf16.xpose.msra.mxu3 %v661_v28 }
  0x61   : > { %868 = vperm.xlu2 %2236, %v801_v29  }
  0x65   : > { %878 = vperm.xlu1 %2235, %v803_v32   ;;  %873 = vperm.xlu0 %2234, %v802_v33  }
  0x66   : > { %676 = vmatpush.bf16.xpose.msra.mxu0 %v634_v34  ;;  %2179 = vmatpush.bf16.xpose.msra.mxu2 %v634_v34 }
  0x67   : > { %735 = vmatpush.bf16.xpose.msra.mxu1 %v658_v35  ;;  %2187 = vmatpush.bf16.xpose.msra.mxu3 %v658_v35 }
  0x69   : > { %883 = vperm.xlu2 %2236, %v804_v36  }
  0x6d   : > { %893 = vperm.xlu1 %2235, %v806_v39   ;;  %888 = vperm.xlu0 %2234, %v805_v40   ;;  %v2619_v39 = vperm.slane %v810_v37, 0  ;;  %v2621_v40 = vperm.slane %v810_v37, 1 }
  0x6e   : > { %677 = vmatpush.bf16.xpose.msra.mxu0 %v631_v41  ;;  %2180 = vmatpush.bf16.xpose.msra.mxu2 %v631_v41 }
  0x6f   : > { %736 = vmatpush.bf16.xpose.msra.mxu1 %v655_v42  ;;  %2188 = vmatpush.bf16.xpose.msra.mxu3 %v655_v42 }
  0x71   : > { %898 = vperm.xlu2 %2236, %v807_v43  }
  0x75   : > { %908 = vperm.xlu1 %2235, %v809_v46   ;;  %903 = vperm.xlu0 %2234, %v808_v47  }
  0x76   : > { %678 = vmatpush.bf16.xpose.msra.mxu0 %v628_v48  ;;  %2181 = vmatpush.bf16.xpose.msra.mxu2 %v628_v48 }
  0x77   : > { %737 = vmatpush.bf16.xpose.msra.mxu1 %v652_v49  ;;  %2189 = vmatpush.bf16.xpose.msra.mxu3 %v652_v49 }
  0x79   : > { %1578 = vperm.xlu2 %2236, %v1556_v50  }
  0x7d   : > { %1584 = vperm.xlu1 %2235, %v1558_v53   ;;  %1581 = vperm.xlu0 %2234, %v1557_v54   ;;  %v1576_v54 = vld [vmem:[%s372_s24] sm:$0x3] }
  0x7e   : > { %679 = vmatpush.bf16.xpose.msra.mxu0 %v625_v55  ;;  %2182 = vmatpush.bf16.xpose.msra.mxu2 %v625_v55 }
  0x7f   : > { %738 = vmatpush.bf16.xpose.msra.mxu1 %v649_v56  ;;  %2190 = vmatpush.bf16.xpose.msra.mxu3 %v649_v56 }
  0x81   : > { %1587 = vperm.xlu2 %2236, %v1559_v57  }
  0x85   : > { %1593 = vperm.xlu1 %2235, %v1561_v58   ;;  %1590 = vperm.xlu0 %2234, %v1560_v59  }
  0x86   : > { %2126 = vmatmul.msk.bf16.vlgmr.msra.gmra.mxu0 %vm593_vm0, %v2149_v60  ;;  %2131 = vmatmul.msk.bf16.vlgmr.msra.gmra.mxu2 %vm593_vm0, %v2154_v61 }
  0x87   : > { %2136 = vmatmul.msk.bf16.vlgmr.msra.gmra.mxu1 %vm593_vm0, %v2149_v60  ;;  %2141 = vmatmul.msk.bf16.vlgmr.msra.gmra.mxu3 %vm593_vm0, %v2154_v61 }
  0x89   : > { %1596 = vperm.xlu2 %2236, %v1562_v62  }
  0x8d   : > { %1602 = vperm.xlu1 %2235, %v1564_v63   ;;  %1599 = vperm.xlu0 %2234, %v1563_v0  }
  0x91   : > { %1605 = vperm.xlu2 %2236, %v1565_v1  }
  0x95   : > { %1611 = vperm.xlu1 %2235, %v1567_v2   ;;  %1608 = vperm.xlu0 %2234, %v1566_v3  }
  0x96   : > { %2127 = vmatmul.msk.bf16.gmra.mxu0 %vm593_vm0, %v2150_v4  ;;  %2132 = vmatmul.msk.bf16.gmra.mxu2 %vm593_vm0, %v2155_v5 }
  0x97   : > { %2137 = vmatmul.msk.bf16.gmra.mxu1 %vm593_vm0, %v2150_v4  ;;  %2142 = vmatmul.msk.bf16.gmra.mxu3 %vm593_vm0, %v2155_v5  ;;  %v2665_v4 = vperm.slane %v1576_v54, 0 }
  0x99   : > { %1614 = vperm.xlu2 %2236, %v1568_v6  }
  0x9d   : > { %1620 = vperm.xlu1 %2235, %v1570_v7   ;;  %1617 = vperm.xlu0 %2234, %v1569_v8  }
  0xa1   : > { %1623 = vperm.xlu2 %2236, %v1571_v9  }
  0xa3   : > { %v834_v26 = vpop.permute.xlu2 %833 }
  0xa4   : > { %v2630_v52 = vadd.f32 %v2619_v39, %v834_v26  ;;  %v2633_v53 = vadd.f32 %v2621_v40, %v834_v26 }
  0xa5   : > { %1629 = vperm.xlu1 %2235, %v1573_v10   ;;  %1626 = vperm.xlu0 %2234, %v1572_v11  }
  0xa6   : > { %2128 = vmatmul.msk.bf16.gmra.mxu0 %vm593_vm0, %v2151_v12  ;;  %2133 = vmatmul.msk.bf16.gmra.mxu2 %vm593_vm0, %v2156_v13 }
  0xa7   : > { %2138 = vmatmul.msk.bf16.gmra.mxu1 %vm593_vm0, %v2151_v12  ;;  %2143 = vmatmul.msk.bf16.gmra.mxu3 %vm593_vm0, %v2156_v13  ;;  %v2673_v13 = vperm.slane %v1576_v54, 1 }
  0xa9   : > { %1632 = vperm.xlu2 %2236, %v1574_v14  }
  0xab   : > { %v839_v29 = vpop.permute.xlu2 %838 }
  0xac   : > { %v2643_v56 = vadd.f32 %v2619_v39, %v839_v29  ;;  %v2646_v57 = vadd.f32 %v2621_v40, %v839_v29 }
  0xad   : > { %1635 = vperm.xlu0 %2234, %v1575_v15  }
  0xb3   : > { %v854_v32 = vpop.permute.xlu2 %853 }
  0xb4   : > { %v2649_v58 = vadd.f32 %v2619_v39, %v854_v32  ;;  %v2654_v61 = vadd.f32 %v2621_v40, %v854_v32 }
  0xb6   : > { %2129 = vmatmul.msk.bf16.gmra.mxu0 %vm593_vm0, %v2152_v16  ;;  %2134 = vmatmul.msk.bf16.gmra.mxu2 %vm593_vm0, %v2157_v17  ;;  %3520 = vst [vmem:[#allocation6_spill] sm:$0xff] %v2649_v58 }
  0xb7   : > { %2139 = vmatmul.msk.bf16.gmra.mxu1 %vm593_vm0, %v2152_v16  ;;  %2144 = vmatmul.msk.bf16.gmra.mxu3 %vm593_vm0, %v2157_v17  ;;  %v814_v18 = vpop.permute.xlu0 %813  ;;  %v824_v22 = vpop.permute.xlu1 %823  ;;  %3521 = vst [vmem:[#allocation7_spill] sm:$0xff] %v2654_v61 }
  0xb8   : > { %v916_v42 = vadd.f32 %v2619_v39, %v814_v18  ;;  %v917_v43 = vadd.f32 %v2621_v40, %v814_v18  ;;  %v2660_v2 = vadd.f32 %v2619_v39, %v824_v22  ;;  %v2663_v3 = vadd.f32 %v2621_v40, %v824_v22 }
  0xbb   : > { %v869_v35 = vpop.permute.xlu2 %868 }
  0xbc   : > { %v2671_v12 = vadd.f32 %v2619_v39, %v869_v35  ;;  %v2676_v15 = vadd.f32 %v2621_v40, %v869_v35 }
  0xbf   : > { %v819_v19 = vpop.permute.xlu0 %818  ;;  %v2596_v24 = vpop.permute.xlu1 %828 }
  0xc0   : > { %v918_v6 = vadd.f32 %v2619_v39, %v819_v19  ;;  %v919_v11 = vadd.f32 %v2621_v40, %v819_v19  ;;  %v2686_v19 = vadd.f32 %v2621_v40, %v2596_v24 }
  0xc3   : > { %v884_v41 = vpop.permute.xlu2 %883 }
  0xc4   : > { %v2689_v22 = vadd.f32 %v2619_v39, %v884_v41 }
  0xc6   : > { %2130 = vmatmul.msk.bf16.gmra.mxu0 %vm593_vm0, %v2153_v20  ;;  %2135 = vmatmul.msk.bf16.gmra.mxu2 %vm593_vm0, %v2158_v21 }
  0xc7   : > { %2140 = vmatmul.msk.bf16.gmra.mxu1 %vm593_vm0, %v2153_v20  ;;  %2145 = vmatmul.msk.bf16.gmra.mxu3 %vm593_vm0, %v2158_v21  ;;  %v2594_v23 = vpop.permute.xlu0 %843  ;;  %v2600_v27 = vpop.permute.xlu1 %848  ;;  %v2682_v21 = vadd.f32 %v2619_v39, %v2596_v24 }
  0xc8   : > { %v2706_v24 = vadd.f32 %v2621_v40, %v2600_v27 }
  0xcb   : > { %v899_v0 = vpop.permute.xlu2 %898 }
  0xcf   : > { %v2598_v25 = vpop.permute.xlu0 %858  ;;  %v864_v30 = vpop.permute.xlu1 %863 }
  0xd0   : > { %v936_v62 = vadd.f32 %v2619_v39, %v864_v30  ;;  %v937_v63 = vadd.f32 %v2621_v40, %v864_v30  ;;  %v2692_v30 = vadd.f32 %v2621_v40, %v884_v41 }
  0xd7   : > { %v2602_v28 = vpop.permute.xlu0 %873  ;;  %v2606_v33 = vpop.permute.xlu1 %878 }
  0xdf   : > { %v2604_v31 = vpop.permute.xlu0 %888  ;;  %v2610_v36 = vpop.permute.xlu1 %893 }
  0xe7   : > { %v2608_v34 = vpop.permute.xlu0 %903  ;;  %v2625_v45 = vpop.permute.xlu1 %908 }
  0xef   : > { %v2617_v38 = vpop.permute.xlu0 %1581  ;;  %v2678_v16 = vpop.permute.xlu1 %1584 }
  0xf0   : > { %vm1641_vm13 = vcmp.eq.s32.totalorder %v2617_v38, %v2665_v4  ;;  %vm1642_vm14 = vcmp.eq.s32.totalorder %v2617_v38, %v2673_v13 }
  0xf7   : > { %v2627_v50 = vpop.permute.xlu0 %1590 }
  0xff   : > { %v2712_v41 = vpop.permute.xlu0 %1599 }
 0x100   : > { %3522 = vst [vmem:[#allocation8_spill] sm:$0xff] %v2712_v41 }
 0x103   : > { %v681_v44 = vpop.f32.mrf.mxu0 }
 0x104   : > { %v956_v46 = vmul.f32 2.0, %v681_v44  ;;  %v740_v47 = vpop.f32.mrf.mxu1  ;;  %v2710_v44 = vadd.f32 %v2619_v39, %v2594_v23 }
 0x105   : > { %v957_v48 = vmul.f32 2.0, %v740_v47  ;;  %v2717_v47 = vadd.f32 %v2621_v40, %v2594_v23  ;;  %v2736_v23 = vadd.f32 %v2621_v40, %v2598_v25 }
 0x106   : > { %v996_v49 = vsub.f32 %v916_v42, %v956_v46 }
 0x107   : > { %v997_v51 = vsub.f32 %v917_v43, %v957_v48  ;;  %v2702_v43 = vadd.f32 %v2619_v39, %v2600_v27  ;;  %v2724_v27 = vadd.f32 %v2619_v39, %v899_v0  ;;  %3524 = vst [vmem:[#allocation10_spill] sm:$0xff] %v2736_v23 }
 0x108   : > { %v2640_v55 = vmax.f32 %v996_v49, 1e-12 }
 0x109   : > { %v2651_v59 = vmax.f32 %v997_v51, 1e-12  ;;  %v706_v60 = vpop.f32.mrf.mxu2  ;;  %v2727_v51 = vadd.f32 %v2621_v40, %v899_v0  ;;  %v2743_v0 = vadd.f32 %v2619_v39, %v2606_v33 }
 0x10a   : > { %2237 = vrsqrt.f32 %v2640_v55  ;;  %v765_v1 = vpop.f32.mrf.mxu3  ;;  %v976_v7 = vmul.f32 2.0, %v706_v60  ;;  %v2732_v60 = vadd.f32 %v2619_v39, %v2598_v25  ;;  %vm1083_vm2 = vcmp.eq.f32.partialorder %v2640_v55, inf }
 0x10b   : > { %2239 = vrsqrt.f32 %v2651_v59  ;;  %v683_v5 = vpop.f32.mrf.mxu0  ;;  %v977_v8 = vmul.f32 2.0, %v765_v1  ;;  %vm1085_vm3 = vcmp.eq.f32.partialorder %v2640_v55, 0.0  ;;  %vm1095_vm5 = vcmp.eq.f32.partialorder %v2651_v59, inf }
 0x10c   : > { %v958_v9 = vmul.f32 2.0, %v683_v5  ;;  %v742_v10 = vpop.f32.mrf.mxu1  ;;  %v1016_v17 = vsub.f32 %v936_v62, %v976_v7  ;;  %3523 = vst [vmem:[#allocation9_spill] sm:$0xff] %v2732_v60  ;;  %v2738_v62 = vpop.permute.xlu2 %1578  ;;  %v2747_v5 = vadd.f32 %v2621_v40, %v2606_v33  ;;  %vm1097_vm6 = vcmp.eq.f32.partialorder %v2651_v59, 0.0 }
 0x10d   : > { %v959_v14 = vmul.f32 2.0, %v742_v10  ;;  %v1017_v18 = vsub.f32 %v937_v63, %v977_v8  ;;  %vm1639_vm1 = vcmp.eq.s32.totalorder %v2738_v62, %v2665_v4  ;;  %vm1640_vm4 = vcmp.eq.s32.totalorder %v2738_v62, %v2673_v13 }
 0x10e   : > { %v998_v20 = vsub.f32 %v918_v6, %v958_v9  ;;  %v2694_v32 = vmax.f32 %v1016_v17, 1e-12  ;;  %v2751_v6 = vadd.f32 %v2619_v39, %v2602_v28  ;;  %v1086_v10 = vand.u32 2147483648, %v2640_v55  ;;  %v2762_v17 = vpop.permute.xlu1 %1593 }
 0x10f   : > { %v999_v26 = vsub.f32 %v919_v11, %v959_v14  ;;  %v2696_v35 = vmax.f32 %v1017_v18, 1e-12 }
 0x110   : > { %v2238_v29 = vpop.eup %2237  ;;  %v2698_v37 = vmax.f32 %v998_v20, 1e-12  ;;  %2241 = vrsqrt.f32 %v2694_v32  ;;  %vm1323_vm7 = vcmp.eq.f32.partialorder %v2694_v32, inf  ;;  %vm1325_vm8 = vcmp.eq.f32.partialorder %v2694_v32, 0.0 }
 0x111   : > { %v2240_v42 = vpop.eup %2239  ;;  %v1077_v46 = vmul.f32 %v2238_v29, %v2640_v55  ;;  %v2721_v49 = vmax.f32 %v999_v26, 1e-12  ;;  %2243 = vrsqrt.f32 %v2696_v35  ;;  %v708_v1 = vpop.f32.mrf.mxu2  ;;  %vm1335_vm9 = vcmp.eq.f32.partialorder %v2696_v35, inf }
 0x112   : > { %v1089_v48 = vmul.f32 %v2240_v42, %v2651_v59  ;;  %2245 = vrsqrt.f32 %v2698_v37  ;;  %v767_v7 = vpop.f32.mrf.mxu3  ;;  %v978_v11 = vmul.f32 2.0, %v708_v1  ;;  %v1326_v1 = vand.u32 2147483648, %v2694_v32 }
 0x113   : > { %v1078_v54 = vmul.f32 %v2238_v29, %v1077_v46  ;;  %v686_v8 = vpop.f32.mrf.mxu0  ;;  %2247 = vrsqrt.f32 %v2721_v49  ;;  %v979_v20 = vmul.f32 2.0, %v767_v7  ;;  %v2772_v7 = vpop.permute.xlu0 %1608  ;;  %vm1337_vm12 = vcmp.eq.f32.partialorder %v2696_v35, 0.0 }
 0x114   : > { %v1090_v63 = vmul.f32 %v2240_v42, %v1089_v48  ;;  %v960_v26 = vmul.f32 2.0, %v686_v8  ;;  %vm1659_vm10 = vcmp.eq.s32.totalorder %v2772_v7, %v2665_v4  ;;  %vm1660_vm11 = vcmp.eq.s32.totalorder %v2772_v7, %v2673_v13 }
 0x115   : > { %v1079_v25 = vmul.f32 0.5, %v1078_v54  ;;  %v1098_v54 = vand.u32 2147483648, %v2651_v59  ;;  %v1338_v62 = vand.u32 2147483648, %v2696_v35  ;;  %vm1107_vm15 = vcmp.eq.f32.partialorder %v2698_v37, inf }
 0x116   : > { %v1091_v9 = vmul.f32 0.5, %v1090_v63  ;;  %v2242_v14 = vpop.eup %2241  ;;  %vm1109_vm0 = vcmp.eq.f32.partialorder %v2698_v37, 0.0 }
 0x117   : > { %v1080_v33 = vsub.f32 1.5, %v1079_v25  ;;  %v2244_v46 = vpop.eup %2243  ;;  %v1317_v63 = vmul.f32 %v2242_v14, %v2694_v32  ;;  %v1018_v25 = vsub.f32 %v2671_v12, %v978_v11 }
 0x118   : > { %v1092_v18 = vsub.f32 1.5, %v1091_v9  ;;  %v2246_v23 = vpop.eup %2245  ;;  %v1329_v41 = vmul.f32 %v2244_v46, %v2696_v35  ;;  %v1019_v9 = vsub.f32 %v2676_v15, %v979_v20 }
 0x119   : > { %v1081_v48 = vmul.f32 %v2238_v29, %v1080_v33  ;;  %v1318_v8 = vmul.f32 %v2242_v14, %v1317_v63  ;;  %v1101_v29 = vmul.f32 %v2246_v23, %v2698_v37  ;;  %v2775_v33 = vmax.f32 %v1018_v25, 1e-12  ;;  %v2248_v58 = vpop.eup %2247 }
 0x11a   : > { %v1093_v60 = vmul.f32 %v2240_v42, %v1092_v18  ;;  %v1330_v42 = vmul.f32 %v2244_v46, %v1329_v41  ;;  %v2779_v11 = vmax.f32 %v1019_v9, 1e-12  ;;  %v1000_v18 = vsub.f32 %v2660_v2, %v960_v26  ;;  %v1739_v9 = vld [vmem:[#allocation2] sm:$0xff] }
 0x11b   : > { %v1082_v61 = vmul.f32 %v1081_v48, %v2640_v55  ;;  %v1319_v20 = vmul.f32 0.5, %v1318_v8  ;;  %v1102_v48 = vmul.f32 %v2246_v23, %v1101_v29  ;;  %v1113_v63 = vmul.f32 %v2248_v58, %v2721_v49 }
 0x11c   : > { %v1094_v12 = vmul.f32 %v1093_v60, %v2651_v59  ;;  %v1331_v2 = vmul.f32 0.5, %v1330_v42  ;;  %2249 = vrsqrt.f32 %v2775_v33 }
 0x11d   : > { %v1084_v15 = vsel %vm1083_vm2, %v2640_v55, %v1082_v61  ;;  %v1320_v55 = vsub.f32 1.5, %v1319_v20  ;;  %v1114_v29 = vmul.f32 %v2248_v58, %v1113_v63  ;;  %v2813_v20 = vpop.permute.xlu1 %1602  ;;  %2251 = vrsqrt.f32 %v2779_v11 }
 0x11e   : > { %v1087_v60 = vsel %vm1085_vm3, %v1086_v10, %v1084_v15  ;;  %v1096_v41 = vsel %vm1095_vm5, %v2651_v59, %v1094_v12  ;;  %v1103_v10 = vmul.f32 0.5, %v1102_v48  ;;  %v1332_v8 = vsub.f32 1.5, %v1331_v2  ;;  %v2807_v12 = vpop.permute.xlu2 %1587 }
 0x11f   : > { %v1679_v61 = vsel %vm1639_vm1, %v1087_v60, 0.0  ;;  %v1099_v26 = vsel %vm1097_vm6, %v1098_v54, %v1096_v41  ;;  %v1321_v54 = vmul.f32 %v2242_v14, %v1320_v55  ;;  %v2811_v15 = vmax.f32 %v1000_v18, 1e-12  ;;  %v745_v14 = vpop.f32.mrf.mxu1 }
 0x120   : > { %v1680_v25 = vsel %vm1640_vm4, %v1099_v26, 0.0  ;;  %v1104_v42 = vsub.f32 1.5, %v1103_v10  ;;  %v1333_v48 = vmul.f32 %v2244_v46, %v1332_v8  ;;  %v1115_v60 = vmul.f32 0.5, %v1114_v29 }
 0x121   : > { %v1719_v59 = vadd.f32 %v1680_v25, %v1679_v61  ;;  %v1322_v41 = vmul.f32 %v1321_v54, %v2694_v32  ;;  %v1110_v46 = vand.u32 2147483648, %v2698_v37  ;;  %2253 = vrsqrt.f32 %v2811_v15 }
 0x122   : > { %v1105_v2 = vmul.f32 %v2246_v23, %v1104_v42  ;;  %v2250_v18 = vpop.eup %2249  ;;  %v1334_v61 = vmul.f32 %v1333_v48, %v2696_v35  ;;  %v1116_v26 = vsub.f32 1.5, %v1115_v60  ;;  %v961_v29 = vmul.f32 2.0, %v745_v14  ;;  %v1749_v60 = vld [vmem:[#allocation2 + $0x28] sm:$0xff] }
 0x123   : > { %v1759_v63 = vadd.f32 %v1739_v9, %v1719_v59  ;;  %v1324_v55 = vsel %vm1323_vm7, %v2694_v32, %v1322_v41  ;;  %v1341_v23 = vmul.f32 %v2250_v18, %v2775_v33  ;;  %v2252_v32 = vpop.eup %2251  ;;  %vm1119_vm1 = vcmp.eq.f32.partialorder %v2721_v49, inf }
 0x124   : > { %v1106_v10 = vmul.f32 %v1105_v2, %v2698_v37  ;;  %v1327_v25 = vsel %vm1325_vm8, %v1326_v1, %v1324_v55  ;;  %v1336_v9 = vsel %vm1335_vm9, %v2696_v35, %v1334_v61  ;;  %v1117_v8 = vmul.f32 %v2248_v58, %v1116_v26 }
 0x125   : > { %1779 = vst [vmem:[#allocation2] sm:$0xff] %v1759_v63  ;;  %v1699_v59 = vsel %vm1659_vm10, %v1327_v25, 0.0  ;;  %v1339_v54 = vsel %vm1337_vm12, %v1338_v62, %v1336_v9  ;;  %v1342_v48 = vmul.f32 %v2250_v18, %v1341_v23  ;;  %v1122_v62 = vand.u32 2147483648, %v2721_v49  ;;  %v1612_v9 = vpop.permute.xlu1 %1611 }
 0x126   : > { %v1108_v42 = vsel %vm1107_vm15, %v2698_v37, %v1106_v10  ;;  %v1700_v1 = vsel %vm1660_vm11, %v1339_v54, 0.0  ;;  %v1118_v63 = vmul.f32 %v1117_v8, %v2721_v49  ;;  %v1353_v2 = vmul.f32 %v2252_v32, %v2779_v11 }
 0x127   : > { %v1111_v58 = vsel %vm1109_vm0, %v1110_v46, %v1108_v42  ;;  %v1729_v35 = vadd.f32 %v1700_v1, %v1699_v59  ;;  %v1343_v41 = vmul.f32 0.5, %v1342_v48  ;;  %vm1121_vm2 = vcmp.eq.f32.partialorder %v2721_v49, 0.0  ;;  %v2254_v61 = vpop.eup %2253  ;;  %v2860_v46 = vpop.permute.xlu2 %1596  ;;  %v1740_v59 = vld [vmem:[#allocation2 + $0x38] sm:$0xff] }
 0x128   : > { %v1681_v14 = vsel %vm1641_vm13, %v1111_v58, 0.0  ;;  %v1120_v7 = vsel %vm1119_vm1, %v2721_v49, %v1118_v63  ;;  %v1001_v37 = vsub.f32 %v2663_v3, %v961_v29  ;;  %v1354_v23 = vmul.f32 %v2252_v32, %v1353_v2  ;;  %v711_v3 = vpop.f32.mrf.mxu2  ;;  %v770_v1 = vpop.f32.mrf.mxu3 }
 0x129   : > { %v1769_v26 = vadd.f32 %v1749_v60, %v1729_v35  ;;  %v1123_v55 = vsel %vm1121_vm2, %v1122_v62, %v1120_v7  ;;  %v1344_v10 = vsub.f32 1.5, %v1343_v41  ;;  %v941_v25 = vadd.f32 %v2621_v40, %v2602_v28  ;;  %v688_v60 = vpop.f32.mrf.mxu0  ;;  %v747_v38 = vpop.f32.mrf.mxu1 }
 0x12a   : > { %v1682_v8 = vsel %vm1642_vm14, %v1123_v55, 0.0  ;;  %v1125_v49 = vmul.f32 %v2254_v61, %v2811_v15  ;;  %v2868_v54 = vmax.f32 %v1001_v37, 1e-12  ;;  %vm1661_vm3 = vcmp.eq.s32.totalorder %v1612_v9, %v2665_v4 }
 0x12b   : > { %1789 = vst [vmem:[#allocation2 + $0x28] sm:$0xff] %v1769_v26  ;;  %v1720_v29 = vadd.f32 %v1682_v8, %v1681_v14  ;;  %v1345_v42 = vmul.f32 %v2250_v18, %v1344_v10  ;;  %v1355_v48 = vmul.f32 0.5, %v1354_v23  ;;  %vm1662_vm4 = vcmp.eq.s32.totalorder %v1612_v9, %v2673_v13 }
 0x12c   : > { %vm1347_vm5 = vcmp.eq.f32.partialorder %v2775_v33, inf  ;;  %v1126_v28 = vmul.f32 %v2254_v61, %v1125_v49  ;;  %2255 = vrsqrt.f32 %v2868_v54  ;;  %v1350_v35 = vand.u32 2147483648, %v2775_v33 }
 0x12d   : > { %v1760_v58 = vadd.f32 %v1740_v59, %v1720_v29  ;;  %v1346_v63 = vmul.f32 %v1345_v42, %v2775_v33  ;;  %v1356_v62 = vsub.f32 1.5, %v1355_v48  ;;  %v980_v2 = vmul.f32 2.0, %v711_v3 }
 0x12e   : > { %v1127_v41 = vmul.f32 0.5, %v1126_v28  ;;  %v981_v18 = vmul.f32 2.0, %v770_v1  ;;  %v962_v14 = vmul.f32 2.0, %v688_v60  ;;  %vm1349_vm6 = vcmp.eq.f32.partialorder %v2775_v33, 0.0 }
 0x12f   : > { %1780 = vst [vmem:[#allocation2 + $0x38] sm:$0xff] %v1760_v58  ;;  %v1348_v7 = vsel %vm1347_vm5, %v2775_v33, %v1346_v63  ;;  %v1357_v37 = vmul.f32 %v2252_v32, %v1356_v62  ;;  %v963_v26 = vmul.f32 2.0, %v747_v38  ;;  %v1020_v23 = vsub.f32 %v2751_v6, %v980_v2  ;;  %v2901_v28 = vpop.permute.xlu2 %1605  ;;  %v1750_v58 = vld [vmem:[#allocation2 + $0x40] sm:$0xff] }
 0x130   : > { %v1351_v55 = vsel %vm1349_vm6, %v1350_v35, %v1348_v7  ;;  %v1128_v10 = vsub.f32 1.5, %v1127_v41  ;;  %v1021_v8 = vsub.f32 %v941_v25, %v981_v18  ;;  %vm1359_vm7 = vcmp.eq.f32.partialorder %v2779_v11, inf }
 0x131   : > { %v1358_v59 = vmul.f32 %v1357_v37, %v2779_v11  ;;  %v1002_v49 = vsub.f32 %v2682_v21, %v962_v14  ;;  %v1003_v3 = vsub.f32 %v2686_v19, %v963_v26  ;;  %v1362_v42 = vand.u32 2147483648, %v2779_v11  ;;  %v772_v37 = vpop.f32.mrf.mxu3 }
 0x132   : > { %v2256_v29 = vpop.eup %2255  ;;  %v1129_v48 = vmul.f32 %v2254_v61, %v1128_v10  ;;  %v2884_v33 = vmax.f32 %v1020_v23, 1e-12  ;;  %v2886_v32 = vmax.f32 %v1021_v8, 1e-12  ;;  %v1701_v6 = vsel %vm1661_vm3, %v1351_v55, 0.0  ;;  %v691_v55 = vpop.f32.mrf.mxu0 }
 0x133   : > { %v1360_v25 = vsel %vm1359_vm7, %v2779_v11, %v1358_v59  ;;  %vm1361_vm8 = vcmp.eq.f32.partialorder %v2779_v11, 0.0  ;;  %v1137_v1 = vmul.f32 %v2256_v29, %v2868_v54  ;;  %v2895_v60 = vmax.f32 %v1002_v49, 1e-12 }
 0x134   : > { %v1363_v21 = vsel %vm1361_vm8, %v1362_v42, %v1360_v25  ;;  %v1130_v19 = vmul.f32 %v1129_v48, %v2811_v15  ;;  %2257 = vrsqrt.f32 %v2884_v33  ;;  %v2899_v61 = vadd.f32 %v2619_v39, %v2610_v36  ;;  %v750_v42 = vpop.f32.mrf.mxu1 }
 0x135   : > { %v1702_v38 = vsel %vm1662_vm4, %v1363_v21, 0.0  ;;  %v1138_v11 = vmul.f32 %v2256_v29, %v1137_v1  ;;  %v2905_v63 = vmax.f32 %v1003_v3, 1e-12  ;;  %v2909_v35 = vadd.f32 %v2621_v40, %v2610_v36  ;;  %v713_v36 = vpop.f32.mrf.mxu2 }
 0x136   : > { %v2913_v62 = vadd.f32 %v2619_v39, %v2604_v31  ;;  %v1730_v41 = vadd.f32 %v1702_v38, %v1701_v6  ;;  %2259 = vrsqrt.f32 %v2886_v32  ;;  %v2918_v2 = vadd.f32 %v2621_v40, %v2604_v31 }
 0x137   : > { %v2922_v9 = vadd.f32 %v2619_v39, %v2625_v45  ;;  %vm1131_vm9 = vcmp.eq.f32.partialorder %v2811_v15, inf  ;;  %v1139_v18 = vmul.f32 0.5, %v1138_v11  ;;  %vm1643_vm10 = vcmp.eq.s32.totalorder %v2678_v16, %v2665_v4 }
 0x138   : > { %v1770_v14 = vadd.f32 %v1750_v58, %v1730_v41  ;;  %v1132_v7 = vsel %vm1131_vm9, %v2811_v15, %v1130_v19  ;;  %2261 = vrsqrt.f32 %v2895_v60  ;;  %vm1644_vm11 = vcmp.eq.s32.totalorder %v2678_v16, %v2673_v13 }
 0x139   : > { %v1134_v31 = vand.u32 2147483648, %v2811_v15  ;;  %v1140_v26 = vsub.f32 1.5, %v1139_v18  ;;  %2263 = vrsqrt.f32 %v2905_v63  ;;  %vm1133_vm12 = vcmp.eq.f32.partialorder %v2811_v15, 0.0 }
 0x13a   : > { %v2258_v10 = vpop.eup %2257  ;;  %1790 = vst [vmem:[#allocation2 + $0x40] sm:$0xff] %v1770_v14  ;;  %vm1143_vm13 = vcmp.eq.f32.partialorder %v2868_v54, inf  ;;  %vm1145_vm14 = vcmp.eq.f32.partialorder %v2868_v54, 0.0  ;;  %v982_v23 = vmul.f32 2.0, %v713_v36  ;;  %v983_v3 = vmul.f32 2.0, %v772_v37  ;;  %v2950_v14 = vpop.permute.xlu2 %1614 }
 0x13b   : > { %v1135_v8 = vsel %vm1133_vm12, %v1134_v31, %v1132_v7  ;;  %v1141_v59 = vmul.f32 %v2256_v29, %v1140_v26  ;;  %v1365_v49 = vmul.f32 %v2258_v10, %v2884_v33  ;;  %v1146_v6 = vand.u32 2147483648, %v2868_v54 }
 0x13c   : > { %v2260_v48 = vpop.eup %2259  ;;  %v1374_v25 = vand.u32 2147483648, %v2884_v33  ;;  %v1022_v1 = vsub.f32 %v2743_v0, %v982_v23  ;;  %v964_v21 = vmul.f32 2.0, %v691_v55  ;;  %v1386_v58 = vand.u32 2147483648, %v2886_v32 }
 0x13d   : > { %v1142_v15 = vmul.f32 %v1141_v59, %v2868_v54  ;;  %v1366_v19 = vmul.f32 %v2258_v10, %v1365_v49  ;;  %v1377_v38 = vmul.f32 %v2260_v48, %v2886_v32  ;;  %v1683_v11 = vsel %vm1643_vm10, %v1135_v8, 0.0  ;;  %v1741_v59 = vld [vmem:[#allocation2 + $0x50] sm:$0xff] }
 0x13e   : > { %v2262_v29 = vpop.eup %2261  ;;  %vm1371_vm15 = vcmp.eq.f32.partialorder %v2884_v33, inf  ;;  %v2947_v41 = vmax.f32 %v1022_v1, 1e-12  ;;  %v1023_v18 = vsub.f32 %v2747_v5, %v983_v3  ;;  %v965_v0 = vmul.f32 2.0, %v750_v42 }
 0x13f   : > { %v2264_v36 = vpop.eup %2263  ;;  %v1144_v7 = vsel %vm1143_vm13, %v2868_v54, %v1142_v15  ;;  %v1367_v37 = vmul.f32 0.5, %v1366_v19  ;;  %vm1373_vm0 = vcmp.eq.f32.partialorder %v2884_v33, 0.0  ;;  %v1378_v31 = vmul.f32 %v2260_v48, %v1377_v38  ;;  %v716_v38 = vpop.f32.mrf.mxu2 }
 0x140   : > { %v1149_v26 = vmul.f32 %v2262_v29, %v2895_v60  ;;  %vm1663_vm1 = vcmp.eq.s32.totalorder %v2950_v14, %v2665_v4  ;;  %v1147_v5 = vsel %vm1145_vm14, %v1146_v6, %v1144_v7  ;;  %vm1383_vm2 = vcmp.eq.f32.partialorder %v2886_v32, inf }
 0x141   : > { %v1161_v55 = vmul.f32 %v2264_v36, %v2905_v63  ;;  %2265 = vrsqrt.f32 %v2947_v41  ;;  %v1004_v23 = vsub.f32 %v2630_v52, %v964_v21  ;;  %v1684_v8 = vsel %vm1644_vm11, %v1147_v5, 0.0 }
 0x142   : > { %v1368_v49 = vsub.f32 1.5, %v1367_v37  ;;  %v1379_v3 = vmul.f32 0.5, %v1378_v31  ;;  %vm1385_vm3 = vcmp.eq.f32.partialorder %v2886_v32, 0.0  ;;  %v1150_v42 = vmul.f32 %v2262_v29, %v1149_v26 }
 0x143   : > { %vm1664_vm4 = vcmp.eq.s32.totalorder %v2950_v14, %v2673_v13  ;;  %v1721_v54 = vadd.f32 %v1684_v8, %v1683_v11  ;;  %vm1155_vm5 = vcmp.eq.f32.partialorder %v2895_v60, inf  ;;  %v1158_v6 = vand.u32 2147483648, %v2895_v60 }
 0x144   : > { %v1162_v1 = vmul.f32 %v2264_v36, %v1161_v55  ;;  %v1005_v52 = vsub.f32 %v2633_v53, %v965_v0  ;;  %v1369_v21 = vmul.f32 %v2258_v10, %v1368_v49  ;;  %v1380_v16 = vsub.f32 1.5, %v1379_v3 }
 0x145   : > { %v1151_v15 = vmul.f32 0.5, %v1150_v42  ;;  %vm1157_vm6 = vcmp.eq.f32.partialorder %v2895_v60, 0.0  ;;  %v2975_v19 = vmax.f32 %v1023_v18, 1e-12  ;;  %vm1645_vm7 = vcmp.eq.s32.totalorder %v2807_v12, %v2665_v4 }
 0x146   : > { %v1761_v7 = vadd.f32 %v1741_v59, %v1721_v54  ;;  %v1163_v11 = vmul.f32 0.5, %v1162_v1  ;;  %vm1167_vm8 = vcmp.eq.f32.partialorder %v2905_v63, inf  ;;  %v2980_v37 = vmax.f32 %v1004_v23, 1e-12  ;;  %v775_v59 = vpop.f32.mrf.mxu3 }
 0x147   : > { %vm1646_vm9 = vcmp.eq.s32.totalorder %v2807_v12, %v2673_v13  ;;  %v1370_v53 = vmul.f32 %v1369_v21, %v2884_v33  ;;  %v1381_v10 = vmul.f32 %v2260_v48, %v1380_v16  ;;  %v1152_v0 = vsub.f32 1.5, %v1151_v15  ;;  %v2266_v18 = vpop.eup %2265 }
 0x148   : > { %2267 = vrsqrt.f32 %v2975_v19  ;;  %1781 = vst [vmem:[#allocation2 + $0x50] sm:$0xff] %v1761_v7  ;;  %v1164_v31 = vsub.f32 1.5, %v1163_v11  ;;  %vm1169_vm10 = vcmp.eq.f32.partialorder %v2905_v63, 0.0  ;;  %v2987_v26 = vmax.f32 %v1005_v52, 1e-12 }
 0x149   : > { %v984_v5 = vmul.f32 2.0, %v716_v38  ;;  %v1372_v55 = vsel %vm1371_vm15, %v2884_v33, %v1370_v53  ;;  %v1382_v23 = vmul.f32 %v1381_v10, %v2886_v32  ;;  %v1153_v8 = vmul.f32 %v2262_v29, %v1152_v0  ;;  %v1751_v38 = vld [vmem:[#allocation2 + $0x58] sm:$0xff] }
 0x14a   : > { %v1389_v48 = vmul.f32 %v2266_v18, %v2947_v41  ;;  %v1375_v49 = vsel %vm1373_vm0, %v1374_v25, %v1372_v55  ;;  %v1165_v3 = vmul.f32 %v2264_v36, %v1164_v31  ;;  %v1170_v42 = vand.u32 2147483648, %v2905_v63 }
 0x14b   : > { %2269 = vrsqrt.f32 %v2980_v37  ;;  %v1703_v54 = vsel %vm1663_vm1, %v1375_v49, 0.0  ;;  %v1384_v29 = vsel %vm1383_vm2, %v2886_v32, %v1382_v23  ;;  %v1154_v1 = vmul.f32 %v1153_v8, %v2895_v60  ;;  %v3020_v32 = vpop.permute.xlu0 %1617  ;;  %v1742_v8 = vld [vmem:[#allocation2 + $0x18] sm:$0xff] }
 0x14c   : > { %v1390_v52 = vmul.f32 %v2266_v18, %v1389_v48  ;;  %v1387_v33 = vsel %vm1385_vm3, %v1386_v58, %v1384_v29  ;;  %v1166_v25 = vmul.f32 %v1165_v3, %v2905_v63  ;;  %v1024_v36 = vsub.f32 %v2689_v22, %v984_v5 }
 0x14d   : > { %v985_v21 = vmul.f32 2.0, %v775_v59  ;;  %v1704_v15 = vsel %vm1664_vm4, %v1387_v33, 0.0  ;;  %v1156_v7 = vsel %vm1155_vm5, %v2895_v60, %v1154_v1  ;;  %2271 = vrsqrt.f32 %v2987_v26  ;;  %v693_v60 = vpop.f32.mrf.mxu0  ;;  %v752_v59 = vpop.f32.mrf.mxu1 }
 0x14e   : > { %v2268_v16 = vpop.eup %2267  ;;  %v1391_v11 = vmul.f32 0.5, %v1390_v52  ;;  %v1731_v58 = vadd.f32 %v1704_v15, %v1703_v54  ;;  %v1159_v22 = vsel %vm1157_vm6, %v1158_v6, %v1156_v7  ;;  %v1168_v53 = vsel %vm1167_vm8, %v2905_v63, %v1166_v25 }
 0x14f   : > { %v1401_v14 = vmul.f32 %v2268_v16, %v2975_v19  ;;  %v3030_v10 = vadd.f32 %v2619_v39, %v2608_v34  ;;  %v1685_v0 = vsel %vm1645_vm7, %v1159_v22, 0.0  ;;  %v1171_v31 = vsel %vm1169_vm10, %v1170_v42, %v1168_v53 }
 0x150   : > { %v1392_v5 = vsub.f32 1.5, %v1391_v11  ;;  %v3039_v55 = vadd.f32 %v2621_v40, %v2608_v34  ;;  %v1771_v23 = vadd.f32 %v1751_v38, %v1731_v58  ;;  %v1686_v39 = vsel %vm1646_vm9, %v1171_v31, 0.0 }
 0x151   : > { %v2270_v6 = vpop.eup %2269  ;;  %v1402_v48 = vmul.f32 %v2268_v16, %v1401_v14  ;;  %vm1665_vm11 = vcmp.eq.s32.totalorder %v3020_v32, %v2665_v4  ;;  %v1722_v63 = vadd.f32 %v1686_v39, %v1685_v0  ;;  %vm1395_vm12 = vcmp.eq.f32.partialorder %v2947_v41, inf }
 0x152   : > { %v1393_v49 = vmul.f32 %v2266_v18, %v1392_v5  ;;  %v1173_v3 = vmul.f32 %v2270_v6, %v2980_v37  ;;  %1791 = vst [vmem:[#allocation2 + $0x58] sm:$0xff] %v1771_v23  ;;  %v3048_v42 = vmax.f32 %v1024_v36, 1e-12  ;;  %v1025_v54 = vsub.f32 %v2692_v30, %v985_v21 }
 0x153   : > { %v1403_v34 = vmul.f32 0.5, %v1402_v48  ;;  %v966_v12 = vmul.f32 2.0, %v693_v60  ;;  %v2272_v29 = vpop.eup %2271  ;;  %vm1666_vm13 = vcmp.eq.s32.totalorder %v3020_v32, %v2673_v13  ;;  %v1762_v1 = vadd.f32 %v1742_v8, %v1722_v63 }
 0x154   : > { %v1394_v52 = vmul.f32 %v1393_v49, %v2947_v41  ;;  %v1174_v33 = vmul.f32 %v2270_v6, %v1173_v3  ;;  %v967_v18 = vmul.f32 2.0, %v752_v59  ;;  %vm1397_vm14 = vcmp.eq.f32.partialorder %v2947_v41, 0.0  ;;  %v1752_v49 = vld [vmem:[#allocation2 + $0x10] sm:$0xff] }
 0x155   : > { %v1404_v25 = vsub.f32 1.5, %v1403_v34  ;;  %v1185_v15 = vmul.f32 %v2272_v29, %v2987_v26  ;;  %2273 = vrsqrt.f32 %v3048_v42  ;;  %1782 = vst [vmem:[#allocation2 + $0x18] sm:$0xff] %v1762_v1  ;;  %v1398_v36 = vand.u32 2147483648, %v2947_v41 }
 0x156   : > { %v1396_v30 = vsel %vm1395_vm12, %v2947_v41, %v1394_v52  ;;  %vm1407_vm15 = vcmp.eq.f32.partialorder %v2975_v19, inf  ;;  %v1175_v21 = vmul.f32 0.5, %v1174_v33  ;;  %vm1647_vm0 = vcmp.eq.s32.totalorder %v2627_v50, %v2665_v4 }
 0x157   : > { %v1405_v38 = vmul.f32 %v2268_v16, %v1404_v25  ;;  %vm1409_vm1 = vcmp.eq.f32.partialorder %v2975_v19, 0.0  ;;  %v1186_v7 = vmul.f32 %v2272_v29, %v1185_v15  ;;  %v3065_v11 = vmax.f32 %v1025_v54, 1e-12  ;;  %v3104_v25 = vpop.permute.xlu1 %1620 }
 0x158   : > { %v1399_v58 = vsel %vm1397_vm14, %v1398_v36, %v1396_v30  ;;  %v1176_v22 = vsub.f32 1.5, %v1175_v21  ;;  %v1006_v53 = vsub.f32 %v2643_v56, %v966_v12  ;;  %v1007_v14 = vsub.f32 %v2646_v57, %v967_v18  ;;  %v718_v56 = vpop.f32.mrf.mxu2 }
 0x159   : > { %v1406_v41 = vmul.f32 %v1405_v38, %v2975_v19  ;;  %v1410_v0 = vand.u32 2147483648, %v2975_v19  ;;  %v1187_v31 = vmul.f32 0.5, %v1186_v7  ;;  %2275 = vrsqrt.f32 %v3065_v11  ;;  %v696_v38 = vpop.f32.mrf.mxu0 }
 0x15a   : > { %vm1648_vm2 = vcmp.eq.s32.totalorder %v2627_v50, %v2673_v13  ;;  %v1177_v16 = vmul.f32 %v2270_v6, %v1176_v22  ;;  %vm1179_vm3 = vcmp.eq.f32.partialorder %v2980_v37, inf  ;;  %vm1181_vm4 = vcmp.eq.f32.partialorder %v2980_v37, 0.0 }
 0x15b   : > { %v3076_v5 = vmax.f32 %v1006_v53, 1e-12  ;;  %v2274_v60 = vpop.eup %2273  ;;  %v1705_v57 = vsel %vm1665_vm11, %v1399_v58, 0.0  ;;  %v1408_v23 = vsel %vm1407_vm15, %v2975_v19, %v1406_v41  ;;  %v1188_v39 = vsub.f32 1.5, %v1187_v31  ;;  %v1743_v31 = vld [vmem:[#allocation2 + $0x30] sm:$0xff] }
 0x15c   : > { %v3084_v8 = vmax.f32 %v1007_v14, 1e-12  ;;  %v1411_v6 = vsel %vm1409_vm1, %v1410_v0, %v1408_v23  ;;  %v1178_v48 = vmul.f32 %v1177_v16, %v2980_v37  ;;  %v1413_v59 = vmul.f32 %v2274_v60, %v3048_v42 }
 0x15d   : > { %2277 = vrsqrt.f32 %v3076_v5  ;;  %v1706_v63 = vsel %vm1666_vm13, %v1411_v6, 0.0  ;;  %v1182_v3 = vand.u32 2147483648, %v2980_v37  ;;  %v1189_v34 = vmul.f32 %v2272_v29, %v1188_v39  ;;  %v777_v29 = vpop.f32.mrf.mxu3 }
 0x15e   : > { %v986_v54 = vmul.f32 2.0, %v718_v56  ;;  %v1732_v12 = vadd.f32 %v1706_v63, %v1705_v57  ;;  %v1180_v19 = vsel %vm1179_vm3, %v2980_v37, %v1178_v48  ;;  %vm1191_vm5 = vcmp.eq.f32.partialorder %v2987_v26, inf }
 0x15f   : > { %v1414_v1 = vmul.f32 %v2274_v60, %v1413_v59  ;;  %v2276_v52 = vpop.eup %2275  ;;  %v1183_v33 = vsel %vm1181_vm4, %v1182_v3, %v1180_v19  ;;  %v1190_v32 = vmul.f32 %v1189_v34, %v2987_v26  ;;  %v1194_v18 = vand.u32 2147483648, %v2987_v26  ;;  %v755_v59 = vpop.f32.mrf.mxu1 }
 0x160   : > { %2279 = vrsqrt.f32 %v3084_v8  ;;  %v1772_v15 = vadd.f32 %v1752_v49, %v1732_v12  ;;  %v1687_v30 = vsel %vm1647_vm0, %v1183_v33, 0.0  ;;  %v1425_v21 = vmul.f32 %v2276_v52, %v3065_v11 }
 0x161   : > { %v1415_v36 = vmul.f32 0.5, %v1414_v1  ;;  %v1192_v37 = vsel %vm1191_vm5, %v2987_v26, %v1190_v32  ;;  %vm1193_vm6 = vcmp.eq.f32.partialorder %v2987_v26, 0.0  ;;  %vm1419_vm7 = vcmp.eq.f32.partialorder %v3048_v42, inf }
 0x162   : > { %v1026_v7 = vsub.f32 %v2913_v62, %v986_v54  ;;  %1792 = vst [vmem:[#allocation2 + $0x10] sm:$0xff] %v1772_v15  ;;  %v1195_v22 = vsel %vm1193_vm6, %v1194_v18, %v1192_v37  ;;  %v1426_v14 = vmul.f32 %v2276_v52, %v1425_v21  ;;  %v987_v41 = vmul.f32 2.0, %v777_v29 }
 0x163   : > { %v2278_v58 = vpop.eup %2277  ;;  %v1416_v53 = vsub.f32 1.5, %v1415_v36  ;;  %vm1667_vm8 = vcmp.eq.s32.totalorder %v3104_v25, %v2665_v4  ;;  %v1688_v0 = vsel %vm1648_vm2, %v1195_v22, 0.0  ;;  %v968_v56 = vmul.f32 2.0, %v696_v38  ;;  %v721_v22 = vpop.f32.mrf.mxu2 }
 0x164   : > { %v1197_v26 = vmul.f32 %v2278_v58, %v3076_v5  ;;  %v3120_v16 = vmax.f32 %v1026_v7, 1e-12  ;;  %v1723_v62 = vadd.f32 %v1688_v0, %v1687_v30  ;;  %v1427_v23 = vmul.f32 0.5, %v1426_v14 }
 0x165   : > { %v1417_v57 = vmul.f32 %v2274_v60, %v1416_v53  ;;  %v1027_v39 = vsub.f32 %v2918_v2, %v987_v41  ;;  %vm1668_vm9 = vcmp.eq.s32.totalorder %v3104_v25, %v2673_v13  ;;  %vm1421_vm10 = vcmp.eq.f32.partialorder %v3048_v42, 0.0  ;;  %v1753_v41 = vld [vmem:[#allocation2 + $0x98] sm:$0xff] }
 0x166   : > { %v2280_v6 = vpop.eup %2279  ;;  %v1422_v50 = vand.u32 2147483648, %v3048_v42  ;;  %v1198_v48 = vmul.f32 %v2278_v58, %v1197_v26  ;;  %2281 = vrsqrt.f32 %v3120_v16  ;;  %v1763_v63 = vadd.f32 %v1743_v31, %v1723_v62 }
 0x167   : > { %v1418_v49 = vmul.f32 %v1417_v57, %v3048_v42  ;;  %v1428_v3 = vsub.f32 1.5, %v1427_v23  ;;  %v1209_v60 = vmul.f32 %v2280_v6, %v3084_v8  ;;  %vm1431_vm11 = vcmp.eq.f32.partialorder %v3065_v11, inf }
 0x168   : > { %v1199_v2 = vmul.f32 0.5, %v1198_v48  ;;  %v3131_v34 = vmax.f32 %v1027_v39, 1e-12  ;;  %v1008_v54 = vsub.f32 %v2710_v44, %v968_v56  ;;  %vm1649_vm12 = vcmp.eq.s32.totalorder %v2762_v17, %v2665_v4  ;;  %1783 = vst [vmem:[#allocation2 + $0x30] sm:$0xff] %v1763_v63  ;;  %v3177_v48 = vpop.permute.xlu2 %1623 }
 0x169   : > { %v1420_v12 = vsel %vm1419_vm7, %v3048_v42, %v1418_v49  ;;  %v1429_v19 = vmul.f32 %v2276_v52, %v1428_v3  ;;  %v1210_v1 = vmul.f32 %v2280_v6, %v1209_v60  ;;  %v969_v33 = vmul.f32 2.0, %v755_v59 }
 0x16a   : > { %v1423_v32 = vsel %vm1421_vm10, %v1422_v50, %v1420_v12  ;;  %vm1433_vm13 = vcmp.eq.f32.partialorder %v3065_v11, 0.0  ;;  %v1200_v18 = vsub.f32 1.5, %v1199_v2  ;;  %2283 = vrsqrt.f32 %v3131_v34  ;;  %v780_v50 = vpop.f32.mrf.mxu3  ;;  %v698_v2 = vpop.f32.mrf.mxu0 }
 0x16b   : > { %v1430_v44 = vmul.f32 %v1429_v19, %v3065_v11  ;;  %v1434_v29 = vand.u32 2147483648, %v3065_v11  ;;  %vm1203_vm14 = vcmp.eq.f32.partialorder %v3076_v5, inf  ;;  %v1211_v15 = vmul.f32 0.5, %v1210_v1 }
 0x16c   : > { %v2282_v30 = vpop.eup %2281  ;;  %vm1650_vm15 = vcmp.eq.s32.totalorder %v2762_v17, %v2673_v13  ;;  %v1201_v52 = vmul.f32 %v2278_v58, %v1200_v18  ;;  %vm1205_vm0 = vcmp.eq.f32.partialorder %v3076_v5, 0.0  ;;  %v3149_v42 = vmax.f32 %v1008_v54, 1e-12 }
 0x16d   : > { %v1009_v36 = vsub.f32 %v2717_v47, %v969_v33  ;;  %v1707_v21 = vsel %vm1667_vm8, %v1423_v32, 0.0  ;;  %v1432_v38 = vsel %vm1431_vm11, %v3065_v11, %v1430_v44  ;;  %v1212_v37 = vsub.f32 1.5, %v1211_v15  ;;  %v1744_v32 = vld [vmem:[#allocation2 + $0x68] sm:$0xff] }
 0x16e   : > { %v1437_v7 = vmul.f32 %v2282_v30, %v3120_v16  ;;  %v1435_v58 = vsel %vm1433_vm13, %v1434_v29, %v1432_v38  ;;  %v1202_v53 = vmul.f32 %v1201_v52, %v3076_v5  ;;  %v1206_v14 = vand.u32 2147483648, %v3076_v5  ;;  %v757_v38 = vpop.f32.mrf.mxu1 }
 0x16f   : > { %2285 = vrsqrt.f32 %v3149_v42  ;;  %v1708_v47 = vsel %vm1668_vm9, %v1435_v58, 0.0  ;;  %v1213_v0 = vmul.f32 %v2280_v6, %v1212_v37  ;;  %vm1215_vm1 = vcmp.eq.f32.partialorder %v3084_v8, inf }
 0x170   : > { %v1438_v31 = vmul.f32 %v2282_v30, %v1437_v7  ;;  %v2284_v26 = vpop.eup %2283  ;;  %v1733_v56 = vadd.f32 %v1708_v47, %v1707_v21  ;;  %v1204_v11 = vsel %vm1203_vm14, %v3076_v5, %v1202_v53  ;;  %v3171_v62 = vmax.f32 %v1009_v36, 1e-12 }
 0x171   : > { %v988_v57 = vmul.f32 2.0, %v721_v22  ;;  %v1207_v23 = vsel %vm1205_vm0, %v1206_v14, %v1204_v11  ;;  %v1214_v25 = vmul.f32 %v1213_v0, %v3084_v8  ;;  %v1449_v6 = vmul.f32 %v2284_v26, %v3131_v34 }
 0x172   : > { %v1439_v39 = vmul.f32 0.5, %v1438_v31  ;;  %v1773_v59 = vadd.f32 %v1753_v41, %v1733_v56  ;;  %v1689_v63 = vsel %vm1649_vm12, %v1207_v23, 0.0  ;;  %v1218_v49 = vand.u32 2147483648, %v3084_v8 }
 0x173   : > { %2287 = vrsqrt.f32 %v3171_v62  ;;  %vm1669_vm2 = vcmp.eq.s32.totalorder %v3177_v48, %v2665_v4  ;;  %v1216_v5 = vsel %vm1215_vm1, %v3084_v8, %v1214_v25  ;;  %vm1217_vm3 = vcmp.eq.f32.partialorder %v3084_v8, 0.0 }
 0x174   : > { %v1440_v3 = vsub.f32 1.5, %v1439_v39  ;;  %v1450_v60 = vmul.f32 %v2284_v26, %v1449_v6  ;;  %1793 = vst [vmem:[#allocation2 + $0x98] sm:$0xff] %v1773_v59  ;;  %v1219_v12 = vsel %vm1217_vm3, %v1218_v49, %v1216_v5  ;;  %vm1443_vm4 = vcmp.eq.f32.partialorder %v3120_v16, inf  ;;  %v782_v49 = vpop.f32.mrf.mxu3 }
 0x175   : > { %v2286_v54 = vpop.eup %2285  ;;  %v1028_v19 = vsub.f32 %v2899_v61, %v988_v57  ;;  %v989_v1 = vmul.f32 2.0, %v780_v50  ;;  %v1690_v33 = vsel %vm1650_vm15, %v1219_v12, 0.0  ;;  %vm1670_vm5 = vcmp.eq.s32.totalorder %v3177_v48, %v2673_v13 }
 0x176   : > { %v1441_v18 = vmul.f32 %v2282_v30, %v1440_v3  ;;  %v1451_v44 = vmul.f32 0.5, %v1450_v60  ;;  %v1221_v8 = vmul.f32 %v2286_v54, %v3149_v42  ;;  %v1724_v29 = vadd.f32 %v1690_v33, %v1689_v63 }
 0x177   : > { %v3198_v15 = vmax.f32 %v1028_v19, 1e-12  ;;  %v1029_v52 = vsub.f32 %v2909_v35, %v989_v1  ;;  %v970_v36 = vmul.f32 2.0, %v698_v2  ;;  %vm1445_vm6 = vcmp.eq.f32.partialorder %v3120_v16, 0.0 }
 0x178   : > { %v1442_v61 = vmul.f32 %v1441_v18, %v3120_v16  ;;  %v1452_v17 = vsub.f32 1.5, %v1451_v44  ;;  %v1222_v21 = vmul.f32 %v2286_v54, %v1221_v8  ;;  %v1764_v37 = vadd.f32 %v1744_v32, %v1724_v29  ;;  %v3243_v32 = vpop.permute.xlu0 %1626 }
 0x179   : > { %v2288_v30 = vpop.eup %2287  ;;  %v1446_v7 = vand.u32 2147483648, %v3120_v16  ;;  %vm1455_vm7 = vcmp.eq.f32.partialorder %v3131_v34, inf  ;;  %2289 = vrsqrt.f32 %v3198_v15  ;;  %vm1651_vm8 = vcmp.eq.s32.totalorder %v2860_v46, %v2665_v4 }
 0x17a   : > { %v1444_v35 = vsel %vm1443_vm4, %v3120_v16, %v1442_v61  ;;  %v1453_v22 = vmul.f32 %v2284_v26, %v1452_v17  ;;  %v1223_v58 = vmul.f32 0.5, %v1222_v21  ;;  %v1233_v53 = vmul.f32 %v2288_v30, %v3171_v62  ;;  %1784 = vst [vmem:[#allocation2 + $0x68] sm:$0xff] %v1764_v37  ;;  %v723_v26 = vpop.f32.mrf.mxu2  ;;  %v701_v21 = vpop.f32.mrf.mxu0 }
 0x17b   : > { %v1447_v14 = vsel %vm1445_vm6, %v1446_v7, %v1444_v35  ;;  %v3212_v47 = vmax.f32 %v1029_v52, 1e-12  ;;  %v1010_v41 = vsub.f32 %v2702_v43, %v970_v36  ;;  %v971_v0 = vmul.f32 2.0, %v757_v38  ;;  %v760_v38 = vpop.f32.mrf.mxu1 }
 0x17c   : > { %v1454_v31 = vmul.f32 %v1453_v22, %v3131_v34  ;;  %vm1457_vm9 = vcmp.eq.f32.partialorder %v3131_v34, 0.0  ;;  %v1224_v56 = vsub.f32 1.5, %v1223_v58  ;;  %v1234_v16 = vmul.f32 %v2288_v30, %v1233_v53 }
 0x17d   : > { %v1709_v11 = vsel %vm1669_vm2, %v1447_v14, 0.0  ;;  %v1458_v57 = vand.u32 2147483648, %v3131_v34  ;;  %vm1227_vm10 = vcmp.eq.f32.partialorder %v3149_v42, inf  ;;  %2291 = vrsqrt.f32 %v3212_v47 }
 0x17e   : > { %v1456_v43 = vsel %vm1455_vm7, %v3131_v34, %v1454_v31  ;;  %v1225_v23 = vmul.f32 %v2286_v54, %v1224_v56  ;;  %v1235_v25 = vmul.f32 0.5, %v1234_v16  ;;  %v3226_v39 = vmax.f32 %v1010_v41, 1e-12  ;;  %v1754_v34 = vld [vmem:[#allocation2 + $0x60] sm:$0xff] }
 0x17f   : > { %v2290_v6 = vpop.eup %2289  ;;  %vm1652_vm11 = vcmp.eq.s32.totalorder %v2860_v46, %v2673_v13  ;;  %v1459_v50 = vsel %vm1457_vm9, %v1458_v57, %v1456_v43  ;;  %vm1229_vm12 = vcmp.eq.f32.partialorder %v3149_v42, 0.0  ;;  %v1011_v59 = vsub.f32 %v2706_v24, %v971_v0  ;;  %v1745_v0 = vld [vmem:[#allocation2 + $0x78] sm:$0xff] }
 0x180   : > { %v990_v63 = vmul.f32 2.0, %v723_v26  ;;  %v1710_v5 = vsel %vm1670_vm5, %v1459_v50, 0.0  ;;  %v1226_v3 = vmul.f32 %v1225_v23, %v3149_v42  ;;  %v1236_v60 = vsub.f32 1.5, %v1235_v25  ;;  %v3525_v25 = vld [vmem:[#allocation6_spill] sm:$0xff]  ;;  %v3526_v50 = vld [vmem:[#allocation7_spill] sm:$0xff] }
 0x181   : > { %v1461_v2 = vmul.f32 %v2290_v6, %v3198_v15  ;;  %v1734_v54 = vadd.f32 %v1710_v5, %v1709_v11  ;;  %v1230_v12 = vand.u32 2147483648, %v3149_v42  ;;  %vm1239_vm13 = vcmp.eq.f32.partialorder %v3171_v62, inf }
 0x182   : > { %2293 = vrsqrt.f32 %v3226_v39  ;;  %v1228_v24 = vsel %vm1227_vm10, %v3149_v42, %v1226_v3  ;;  %v1237_v19 = vmul.f32 %v2288_v30, %v1236_v60  ;;  %v991_v1 = vmul.f32 2.0, %v782_v49  ;;  %v3527_v3 = vld [vmem:[#allocation8_spill] sm:$0xff] }
 0x183   : > { %v1462_v48 = vmul.f32 %v2290_v6, %v1461_v2  ;;  %v2292_v33 = vpop.eup %2291  ;;  %v1774_v18 = vadd.f32 %v1754_v34, %v1734_v54  ;;  %v1231_v44 = vsel %vm1229_vm12, %v1230_v12, %v1228_v24  ;;  %v3247_v8 = vmax.f32 %v1011_v59, 1e-12 }
 0x184   : > { %v1030_v29 = vsub.f32 %v2724_v27, %v990_v63  ;;  %v1691_v52 = vsel %vm1651_vm8, %v1231_v44, 0.0  ;;  %v1238_v36 = vmul.f32 %v1237_v19, %v3171_v62  ;;  %v1473_v17 = vmul.f32 %v2292_v33, %v3212_v47 }
 0x185   : > { %v1463_v61 = vmul.f32 0.5, %v1462_v48  ;;  %1794 = vst [vmem:[#allocation2 + $0x60] sm:$0xff] %v1774_v18  ;;  %vm1241_vm14 = vcmp.eq.f32.partialorder %v3171_v62, 0.0  ;;  %v1242_v42 = vand.u32 2147483648, %v3171_v62  ;;  %vm1467_vm15 = vcmp.eq.f32.partialorder %v3198_v15, inf }
 0x186   : > { %2295 = vrsqrt.f32 %v3247_v8  ;;  %vm1671_vm0 = vcmp.eq.s32.totalorder %v3243_v32, %v2665_v4  ;;  %v1240_v27 = vsel %vm1239_vm13, %v3171_v62, %v1238_v36  ;;  %v1474_v37 = vmul.f32 %v2292_v33, %v1473_v17 }
 0x187   : > { %v1464_v30 = vsub.f32 1.5, %v1463_v61  ;;  %v3264_v7 = vmax.f32 %v1030_v29, 1e-12  ;;  %v1243_v22 = vsel %vm1241_vm14, %v1242_v42, %v1240_v27  ;;  %v1031_v58 = vsub.f32 %v2727_v51, %v991_v1 }
 0x188   : > { %v2294_v35 = vpop.eup %2293  ;;  %v972_v53 = vmul.f32 2.0, %v701_v21  ;;  %v973_v14 = vmul.f32 2.0, %v760_v38  ;;  %v1692_v41 = vsel %vm1652_vm11, %v1243_v22, 0.0  ;;  %v1475_v56 = vmul.f32 0.5, %v1474_v37  ;;  %v1755_v21 = vld [vmem:[#allocation2 + $0x20] sm:$0xff]  ;;  %v3318_v37 = vpop.permute.xlu1 %1629 }
 0x189   : > { %v1465_v31 = vmul.f32 %v2290_v6, %v1464_v30  ;;  %v1245_v16 = vmul.f32 %v2294_v35, %v3226_v39  ;;  %vm1672_vm1 = vcmp.eq.s32.totalorder %v3243_v32, %v2673_v13  ;;  %v1725_v62 = vadd.f32 %v1692_v41, %v1691_v52  ;;  %v726_v52 = vpop.f32.mrf.mxu2  ;;  %v703_v41 = vpop.f32.mrf.mxu0 }
 0x18a   : > { %vm1469_vm2 = vcmp.eq.f32.partialorder %v3198_v15, 0.0  ;;  %v1470_v26 = vand.u32 2147483648, %v3198_v15  ;;  %2297 = vrsqrt.f32 %v3264_v7  ;;  %v1476_v11 = vsub.f32 1.5, %v1475_v56 }
 0x18b   : > { %v1466_v51 = vmul.f32 %v1465_v31, %v3198_v15  ;;  %vm1479_vm3 = vcmp.eq.f32.partialorder %v3212_v47, inf  ;;  %v1246_v46 = vmul.f32 %v2294_v35, %v1245_v16  ;;  %v1765_v43 = vadd.f32 %v1745_v0, %v1725_v62 }
 0x18c   : > { %v2296_v57 = vpop.eup %2295  ;;  %v3278_v23 = vmax.f32 %v1031_v58, 1e-12  ;;  %v1012_v6 = vsub.f32 %v3525_v25, %v972_v53  ;;  %v1013_v59 = vsub.f32 %v3526_v50, %v973_v14  ;;  %v1477_v49 = vmul.f32 %v2292_v33, %v1476_v11  ;;  %v785_v14 = vpop.f32.mrf.mxu3 }
 0x18d   : > { %v1468_v63 = vsel %vm1467_vm15, %v3198_v15, %v1466_v51  ;;  %v1247_v5 = vmul.f32 0.5, %v1246_v46  ;;  %v1257_v34 = vmul.f32 %v2296_v57, %v3247_v8  ;;  %vm1653_vm4 = vcmp.eq.s32.totalorder %v3527_v3, %v2665_v4  ;;  %1785 = vst [vmem:[#allocation2 + $0x78] sm:$0xff] %v1765_v43 }
 0x18e   : > { %v1471_v60 = vsel %vm1469_vm2, %v1470_v26, %v1468_v63  ;;  %vm1481_vm5 = vcmp.eq.f32.partialorder %v3212_v47, 0.0  ;;  %v1482_v2 = vand.u32 2147483648, %v3212_v47  ;;  %2299 = vrsqrt.f32 %v3278_v23 }
 0x18f   : > { %v1478_v54 = vmul.f32 %v1477_v49, %v3212_v47  ;;  %v1248_v12 = vsub.f32 1.5, %v1247_v5  ;;  %vm1251_vm6 = vcmp.eq.f32.partialorder %v3226_v39, inf  ;;  %v1258_v24 = vmul.f32 %v2296_v57, %v1257_v34  ;;  %v762_v34 = vpop.f32.mrf.mxu1 }
 0x190   : > { %v2298_v19 = vpop.eup %2297  ;;  %v1711_v48 = vsel %vm1671_vm0, %v1471_v60, 0.0  ;;  %vm1253_vm7 = vcmp.eq.f32.partialorder %v3226_v39, 0.0  ;;  %v3299_v15 = vmax.f32 %v1012_v6, 1e-12  ;;  %v3301_v1 = vmax.f32 %v1013_v59, 1e-12 }
 0x191   : > { %v1480_v33 = vsel %vm1479_vm3, %v3212_v47, %v1478_v54  ;;  %v1249_v18 = vmul.f32 %v2294_v35, %v1248_v12  ;;  %v1259_v44 = vmul.f32 0.5, %v1258_v24  ;;  %v1485_v29 = vmul.f32 %v2298_v19, %v3264_v7 }
 0x192   : > { %vm1654_vm8 = vcmp.eq.s32.totalorder %v3527_v3, %v2673_v13  ;;  %v1483_v36 = vsel %vm1481_vm5, %v1482_v2, %v1480_v33  ;;  %v1254_v61 = vand.u32 2147483648, %v3226_v39  ;;  %vm1263_vm9 = vcmp.eq.f32.partialorder %v3247_v8, inf  ;;  %v1746_v2 = vld [vmem:[#allocation2 + $0x80] sm:$0xff] }
 0x193   : > { %2301 = vrsqrt.f32 %v3299_v15  ;;  %v1712_v17 = vsel %vm1672_vm1, %v1483_v36, 0.0  ;;  %v1250_v38 = vmul.f32 %v1249_v18, %v3226_v39  ;;  %v1260_v42 = vsub.f32 1.5, %v1259_v44 }
 0x194   : > { %v1486_v27 = vmul.f32 %v2298_v19, %v1485_v29  ;;  %v2300_v30 = vpop.eup %2299  ;;  %v1735_v47 = vadd.f32 %v1712_v17, %v1711_v48  ;;  %vm1265_vm10 = vcmp.eq.f32.partialorder %v3247_v8, 0.0  ;;  %2303 = vrsqrt.f32 %v3301_v1  ;;  %v3528_v48 = vld [vmem:[#allocation9_spill] sm:$0xff] }
 0x195   : > { %v992_v35 = vmul.f32 2.0, %v726_v52  ;;  %v1252_v22 = vsel %vm1251_vm6, %v3226_v39, %v1250_v38  ;;  %v1261_v32 = vmul.f32 %v2296_v57, %v1260_v42  ;;  %v1497_v53 = vmul.f32 %v2300_v30, %v3278_v23  ;;  %v728_v38 = vpop.f32.mrf.mxu2 }
 0x196   : > { %v1487_v58 = vmul.f32 0.5, %v1486_v27  ;;  %v1775_v0 = vadd.f32 %v1755_v21, %v1735_v47  ;;  %v1255_v31 = vsel %vm1253_vm7, %v1254_v61, %v1252_v22  ;;  %v1266_v56 = vand.u32 2147483648, %v3247_v8  ;;  %v3529_v22 = vld [vmem:[#allocation10_spill] sm:$0xff] }
 0x197   : > { %vm1491_vm11 = vcmp.eq.f32.partialorder %v3264_v7, inf  ;;  %vm1673_vm12 = vcmp.eq.s32.totalorder %v3318_v37, %v2665_v4  ;;  %v1693_v16 = vsel %vm1653_vm4, %v1255_v31, 0.0  ;;  %v1262_v62 = vmul.f32 %v1261_v32, %v3247_v8  ;;  %v1756_v31 = vld [vmem:[#allocation2 + $0x48] sm:$0xff] }
 0x198   : > { %v1488_v26 = vsub.f32 1.5, %v1487_v58  ;;  %v1498_v51 = vmul.f32 %v2300_v30, %v1497_v53  ;;  %1795 = vst [vmem:[#allocation2 + $0x20] sm:$0xff] %v1775_v0  ;;  %vm1493_vm13 = vcmp.eq.f32.partialorder %v3264_v7, 0.0  ;;  %v1032_v39 = vsub.f32 %v3030_v10, %v992_v35 }
 0x199   : > { %v2302_v11 = vpop.eup %2301  ;;  %v993_v46 = vmul.f32 2.0, %v785_v14  ;;  %v974_v57 = vmul.f32 2.0, %v703_v41  ;;  %v1264_v43 = vsel %vm1263_vm9, %v3247_v8, %v1262_v62  ;;  %vm1674_vm14 = vcmp.eq.s32.totalorder %v3318_v37, %v2673_v13 }
 0x19a   : > { %v1489_v25 = vmul.f32 %v2298_v19, %v1488_v26  ;;  %v1499_v6 = vmul.f32 0.5, %v1498_v51  ;;  %v1269_v50 = vmul.f32 %v2302_v11, %v3299_v15  ;;  %v2304_v59 = vpop.eup %2303  ;;  %v1267_v63 = vsel %vm1265_vm10, %v1266_v56, %v1264_v43 }
 0x19b   : > { %v1494_v49 = vand.u32 2147483648, %v3264_v7  ;;  %v3347_v10 = vmax.f32 %v1032_v39, 1e-12  ;;  %v1033_v5 = vsub.f32 %v3039_v55, %v993_v46  ;;  %v1694_v60 = vsel %vm1654_vm8, %v1267_v63, 0.0 }
 0x19c   : > { %v1490_v54 = vmul.f32 %v1489_v25, %v3264_v7  ;;  %v1500_v12 = vsub.f32 1.5, %v1499_v6  ;;  %v1270_v24 = vmul.f32 %v2302_v11, %v1269_v50  ;;  %v1726_v19 = vadd.f32 %v1694_v60, %v1693_v16  ;;  %v787_v25 = vpop.f32.mrf.mxu3 }
 0x19d   : > { %v1281_v8 = vmul.f32 %v2304_v59, %v3301_v1  ;;  %2305 = vrsqrt.f32 %v3347_v10  ;;  %v1014_v33 = vsub.f32 %v3528_v48, %v974_v57  ;;  %v975_v3 = vmul.f32 2.0, %v762_v34 }
 0x19e   : > { %v1492_v55 = vsel %vm1491_vm11, %v3264_v7, %v1490_v54  ;;  %v1501_v18 = vmul.f32 %v2300_v30, %v1500_v12  ;;  %v1271_v44 = vmul.f32 0.5, %v1270_v24  ;;  %vm1655_vm15 = vcmp.eq.s32.totalorder %v2813_v20, %v2665_v4  ;;  %v1747_v12 = vld [vmem:[#allocation2 + $0x8] sm:$0xff] }
 0x19f   : > { %v1766_v29 = vadd.f32 %v1746_v2, %v1726_v19  ;;  %v1495_v52 = vsel %vm1493_vm13, %v1494_v49, %v1492_v55  ;;  %vm1503_vm0 = vcmp.eq.f32.partialorder %v3278_v23, inf  ;;  %v1282_v36 = vmul.f32 %v2304_v59, %v1281_v8 }
 0x1a0   : > { %v1502_v61 = vmul.f32 %v1501_v18, %v3278_v23  ;;  %vm1505_vm1 = vcmp.eq.f32.partialorder %v3278_v23, 0.0  ;;  %v1272_v17 = vsub.f32 1.5, %v1271_v44  ;;  %v3367_v21 = vmax.f32 %v1033_v5, 1e-12 }
 0x1a1   : > { %1786 = vst [vmem:[#allocation2 + $0x80] sm:$0xff] %v1766_v29  ;;  %v1713_v42 = vsel %vm1673_vm12, %v1495_v52, 0.0  ;;  %v1506_v27 = vand.u32 2147483648, %v3278_v23  ;;  %v1283_v7 = vmul.f32 0.5, %v1282_v36  ;;  %v3373_v30 = vmax.f32 %v1014_v33, 1e-12  ;;  %v1633_v29 = vpop.permute.xlu2 %1632 }
 0x1a2   : > { %v1504_v47 = vsel %vm1503_vm0, %v3278_v23, %v1502_v61  ;;  %v1273_v35 = vmul.f32 %v2302_v11, %v1272_v17  ;;  %2307 = vrsqrt.f32 %v3367_v21  ;;  %v1015_v32 = vsub.f32 %v3529_v22, %v975_v3 }
 0x1a3   : > { %v2306_v58 = vpop.eup %2305  ;;  %v1507_v53 = vsel %vm1505_vm1, %v1506_v27, %v1504_v47  ;;  %vm1275_vm2 = vcmp.eq.f32.partialorder %v3299_v15, inf  ;;  %v1284_v14 = vsub.f32 1.5, %v1283_v7  ;;  %v994_v41 = vmul.f32 2.0, %v728_v38 }
 0x1a4   : > { %v1714_v0 = vsel %vm1674_vm14, %v1507_v53, 0.0  ;;  %v1274_v56 = vmul.f32 %v1273_v35, %v3299_v15  ;;  %v1509_v23 = vmul.f32 %v2306_v58, %v3347_v10  ;;  %2309 = vrsqrt.f32 %v3373_v30 }
 0x1a5   : > { %v1736_v16 = vadd.f32 %v1714_v0, %v1713_v42  ;;  %vm1277_vm3 = vcmp.eq.f32.partialorder %v3299_v15, 0.0  ;;  %v1278_v62 = vand.u32 2147483648, %v3299_v15  ;;  %v1285_v26 = vmul.f32 %v2304_v59, %v1284_v14 }
 0x1a6   : > { %v1276_v51 = vsel %vm1275_vm2, %v3299_v15, %v1274_v56  ;;  %vm1287_vm4 = vcmp.eq.f32.partialorder %v3301_v1, inf  ;;  %v1510_v11 = vmul.f32 %v2306_v58, %v1509_v23  ;;  %v3389_v37 = vmax.f32 %v1015_v32, 1e-12 }
 0x1a7   : > { %v1776_v39 = vadd.f32 %v1756_v31, %v1736_v16  ;;  %v1279_v46 = vsel %vm1277_vm3, %v1278_v62, %v1276_v51  ;;  %v1286_v57 = vmul.f32 %v1285_v26, %v3301_v1  ;;  %v1034_v43 = vsub.f32 %v2922_v9, %v994_v41  ;;  %v1757_v62 = vld [vmem:[#allocation2 + $0x70] sm:$0xff] }
 0x1a8   : > { %v2308_v6 = vpop.eup %2307  ;;  %v1695_v50 = vsel %vm1655_vm15, %v1279_v46, 0.0  ;;  %v1290_v59 = vand.u32 2147483648, %v3301_v1  ;;  %v1511_v15 = vmul.f32 0.5, %v1510_v11  ;;  %2311 = vrsqrt.f32 %v3389_v37 }
 0x1a9   : > { %vm1656_vm5 = vcmp.eq.s32.totalorder %v2813_v20, %v2673_v13  ;;  %1796 = vst [vmem:[#allocation2 + $0x48] sm:$0xff] %v1776_v39  ;;  %v1288_v63 = vsel %vm1287_vm4, %v3301_v1, %v1286_v57  ;;  %vm1289_vm6 = vcmp.eq.f32.partialorder %v3301_v1, 0.0  ;;  %v1521_v9 = vmul.f32 %v2308_v6, %v3367_v21 }
 0x1aa   : > { %v2310_v49 = vpop.eup %2309  ;;  %v1291_v5 = vsel %vm1289_vm6, %v1290_v59, %v1288_v63  ;;  %v1512_v34 = vsub.f32 1.5, %v1511_v15  ;;  %v3403_v60 = vmax.f32 %v1034_v43, 1e-12  ;;  %v995_v2 = vmul.f32 2.0, %v787_v25 }
 0x1ab   : > { %v1696_v54 = vsel %vm1656_vm5, %v1291_v5, 0.0  ;;  %v1522_v24 = vmul.f32 %v2308_v6, %v1521_v9  ;;  %v1293_v19 = vmul.f32 %v2310_v49, %v3373_v30  ;;  %v955_v20 = vadd.f32 %v2621_v40, %v2625_v45  ;;  %v1748_v5 = vld [vmem:[#allocation2 + $0x88] sm:$0xff] }
 0x1ac   : > { %v1727_v8 = vadd.f32 %v1696_v54, %v1695_v50  ;;  %v1513_v48 = vmul.f32 %v2306_v58, %v1512_v34  ;;  %2313 = vrsqrt.f32 %v3403_v60  ;;  %vm1515_vm7 = vcmp.eq.f32.partialorder %v3347_v10, inf }
 0x1ad   : > { %v1523_v1 = vmul.f32 0.5, %v1522_v24  ;;  %v1294_v33 = vmul.f32 %v2310_v49, %v1293_v19  ;;  %v1035_v3 = vsub.f32 %v955_v20, %v995_v2  ;;  %v1518_v52 = vand.u32 2147483648, %v3347_v10  ;;  %v1636_v20 = vpop.permute.xlu0 %1635 }
 0x1ae   : > { %v2312_v55 = vpop.eup %2311  ;;  %v1767_v18 = vadd.f32 %v1747_v12, %v1727_v8  ;;  %v1514_v44 = vmul.f32 %v1513_v48, %v3347_v10  ;;  %vm1517_vm8 = vcmp.eq.f32.partialorder %v3347_v10, 0.0  ;;  %vm1675_vm9 = vcmp.eq.s32.totalorder %v1633_v29, %v2665_v4 }
 0x1af   : > { %v1524_v36 = vsub.f32 1.5, %v1523_v1  ;;  %v1295_v61 = vmul.f32 0.5, %v1294_v33  ;;  %v1305_v40 = vmul.f32 %v2312_v55, %v3389_v37  ;;  %v3415_v17 = vmax.f32 %v1035_v3, 1e-12 }
 0x1b0   : > { %1787 = vst [vmem:[#allocation2 + $0x8] sm:$0xff] %v1767_v18  ;;  %v1516_v45 = vsel %vm1515_vm7, %v3347_v10, %v1514_v44  ;;  %vm1676_vm10 = vcmp.eq.s32.totalorder %v1633_v29, %v2673_v13  ;;  %vm1527_vm11 = vcmp.eq.f32.partialorder %v3367_v21, inf  ;;  %vm1529_vm12 = vcmp.eq.f32.partialorder %v3367_v21, 0.0  ;;  %v1758_v44 = vld [vmem:[#allocation2 + $0x90] sm:$0xff] }
 0x1b1   : > { %v1519_v38 = vsel %vm1517_vm8, %v1518_v52, %v1516_v45  ;;  %v1525_v42 = vmul.f32 %v2308_v6, %v1524_v36  ;;  %v1296_v27 = vsub.f32 1.5, %v1295_v61  ;;  %v1306_v7 = vmul.f32 %v2312_v55, %v1305_v40 }
 0x1b2   : > { %v2314_v47 = vpop.eup %2313  ;;  %2315 = vrsqrt.f32 %v3415_v17  ;;  %v1715_v10 = vsel %vm1675_vm9, %v1519_v38, 0.0  ;;  %v1530_v53 = vand.u32 2147483648, %v3367_v21  ;;  %vm1299_vm13 = vcmp.eq.f32.partialorder %v3373_v30, inf }
 0x1b3   : > { %v1526_v35 = vmul.f32 %v1525_v42, %v3367_v21  ;;  %v1297_v22 = vmul.f32 %v2310_v49, %v1296_v27  ;;  %v1307_v32 = vmul.f32 0.5, %v1306_v7  ;;  %v1533_v58 = vmul.f32 %v2314_v47, %v3403_v60 }
 0x1b4   : > { %vm1301_vm14 = vcmp.eq.f32.partialorder %v3373_v30, 0.0  ;;  %v1302_v23 = vand.u32 2147483648, %v3373_v30  ;;  %vm1657_vm15 = vcmp.eq.s32.totalorder %v2901_v28, %v2665_v4  ;;  %vm1311_vm0 = vcmp.eq.f32.partialorder %v3389_v37, inf }
 0x1b5   : > { %v1528_v14 = vsel %vm1527_vm11, %v3367_v21, %v1526_v35  ;;  %v1298_v41 = vmul.f32 %v1297_v22, %v3373_v30  ;;  %v1308_v0 = vsub.f32 1.5, %v1307_v32  ;;  %v1534_v31 = vmul.f32 %v2314_v47, %v1533_v58 }
 0x1b6   : > { %v1531_v56 = vsel %vm1529_vm12, %v1530_v53, %v1528_v14  ;;  %v1314_v59 = vand.u32 2147483648, %v3389_v37  ;;  %vm1313_vm1 = vcmp.eq.f32.partialorder %v3389_v37, 0.0  ;;  %vm1658_vm2 = vcmp.eq.s32.totalorder %v2901_v28, %v2673_v13 }
 0x1b7   : > { %v1716_v16 = vsel %vm1676_vm10, %v1531_v56, 0.0  ;;  %v1300_v26 = vsel %vm1299_vm13, %v3373_v30, %v1298_v41  ;;  %v1309_v51 = vmul.f32 %v2312_v55, %v1308_v0  ;;  %v1535_v11 = vmul.f32 0.5, %v1534_v31 }
 0x1b8   : > { %v2316_v21 = vpop.eup %2315  ;;  %v1737_v39 = vadd.f32 %v1716_v16, %v1715_v10  ;;  %v1303_v46 = vsel %vm1301_vm14, %v1302_v23, %v1300_v26  ;;  %vm1539_vm3 = vcmp.eq.f32.partialorder %v3403_v60, inf  ;;  %vm1541_vm4 = vcmp.eq.f32.partialorder %v3403_v60, 0.0 }
 0x1b9   : > { %v1697_v57 = vsel %vm1657_vm15, %v1303_v46, 0.0  ;;  %v1310_v43 = vmul.f32 %v1309_v51, %v3389_v37  ;;  %v1536_v25 = vsub.f32 1.5, %v1535_v11  ;;  %v1545_v6 = vmul.f32 %v2316_v21, %v3415_v17 }
 0x1ba   : > { %v1777_v50 = vadd.f32 %v1757_v62, %v1737_v39  ;;  %vm1677_vm5 = vcmp.eq.s32.totalorder %v1636_v20, %v2665_v4  ;;  %vm1551_vm6 = vcmp.eq.f32.partialorder %v3415_v17, inf  ;;  %v1554_v1 = vand.u32 2147483648, %v3415_v17 }
 0x1bb   : > { %v1312_v30 = vsel %vm1311_vm0, %v3389_v37, %v1310_v43  ;;  %v1537_v15 = vmul.f32 %v2314_v47, %v1536_v25  ;;  %v1546_v63 = vmul.f32 %v2316_v21, %v1545_v6  ;;  %v1542_v37 = vand.u32 2147483648, %v3403_v60 }
 0x1bc   : > { %1797 = vst [vmem:[#allocation2 + $0x70] sm:$0xff] %v1777_v50  ;;  %v1315_v9 = vsel %vm1313_vm1, %v1314_v59, %v1312_v30  ;;  %vm1553_vm7 = vcmp.eq.f32.partialorder %v3415_v17, 0.0  ;;  %vm1678_vm8 = vcmp.eq.s32.totalorder %v1636_v20, %v2673_v13 }
 0x1bd   : > { %v1698_v49 = vsel %vm1658_vm2, %v1315_v9, 0.0  ;;  %v1538_v34 = vmul.f32 %v1537_v15, %v3403_v60  ;;  %v1547_v2 = vmul.f32 0.5, %v1546_v63 }
 0x1be   : > { %v1728_v54 = vadd.f32 %v1698_v49, %v1697_v57 }
 0x1bf   : > { %v1540_v12 = vsel %vm1539_vm3, %v3403_v60, %v1538_v34  ;;  %v1548_v24 = vsub.f32 1.5, %v1547_v2 }
 0x1c0   : > { %v1768_v19 = vadd.f32 %v1748_v5, %v1728_v54  ;;  %v1543_v8 = vsel %vm1541_vm4, %v1542_v37, %v1540_v12 }
 0x1c1   : > { %v1549_v28 = vmul.f32 %v2316_v21, %v1548_v24  ;;  %v1717_v33 = vsel %vm1677_vm5, %v1543_v8, 0.0 }
 0x1c2   : > { %1788 = vst [vmem:[#allocation2 + $0x88] sm:$0xff] %v1768_v19 }
 0x1c3   : > { %v1550_v48 = vmul.f32 %v1549_v28, %v3415_v17 }
 0x1c5   : > { %v1552_v55 = vsel %vm1551_vm6, %v3415_v17, %v1550_v48 }
 0x1c6   : > { %v1555_v18 = vsel %vm1553_vm7, %v1554_v1, %v1552_v55 }
 0x1c7   : > { %v1718_v60 = vsel %vm1678_vm8, %v1555_v18, 0.0 }
 0x1c8   : > { %v1738_v3 = vadd.f32 %v1718_v60, %v1717_v33 }
 0x1ca   : > { %v1778_v29 = vadd.f32 %v1758_v44, %v1738_v3 }
 0x1cc   : > { %1798 = vst [vmem:[#allocation2 + $0x90] sm:$0xff] %v1778_v29 }
 0x1cd PF: > { %p2146_p10 = scmp.ne.s32.totalorder %s2353_s28, 1 }
 0x1cf   : > { %1802 = sbr.rel (%p2146_p10) target bundleno = 635 (0x27b), region = 56 }
 0x1d4   : > { %v1805_v4 = vld [vmem:[#allocation2 + $0x50] sm:$0xff]  ;;  %v1803_v52 = vld [vmem:[#allocation2] sm:$0xff]  ;;  %v1806_v61 = vld [vmem:[#allocation2 + $0x18] sm:$0xff]  ;;  %vm1863_vm9 = vcmask 7168  }
 0x1d5   : > { %v1807_v36 = vld [vmem:[#allocation2 + $0x30] sm:$0xff]  ;;  %1827 = vadd.xlane.f32.xlu1 %v1805_v4  ;;  %1823 = vadd.xlane.f32.xlu0 %v1803_v52  ;;  %v1804_v40 = vld [vmem:[#allocation2 + $0x38] sm:$0xff]  ;;  %v1808_v45 = vld [vmem:[#allocation2 + $0x68] sm:$0xff] }
 0x1d6   : > { %1831 = vadd.xlane.f32.xlu2 %v1807_v36  ;;  %v1810_v13 = vld [vmem:[#allocation2 + $0x80] sm:$0xff]  ;;  %v1809_v17 = vld [vmem:[#allocation2 + $0x78] sm:$0xff]  ;;  %v1811_v38 = vld [vmem:[#allocation2 + $0x8] sm:$0xff] }
 0x1d7   : > { %v1813_v42 = vld [vmem:[#allocation2 + $0x28] sm:$0xff]  ;;  %v1814_v7 = vld [vmem:[#allocation2 + $0x40] sm:$0xff]  ;;  %v1816_v47 = vld [vmem:[#allocation2 + $0x10] sm:$0xff] }
 0x1d8   : > { %v1812_v27 = vld [vmem:[#allocation2 + $0x88] sm:$0xff]  ;;  %v1815_v35 = vld [vmem:[#allocation2 + $0x58] sm:$0xff]  ;;  %v1819_v32 = vld [vmem:[#allocation2 + $0x20] sm:$0xff] }
 0x1d9   : > { %v1817_v22 = vld [vmem:[#allocation2 + $0x98] sm:$0xff]  ;;  %v1818_v58 = vld [vmem:[#allocation2 + $0x60] sm:$0xff]  ;;  %v1820_v10 = vld [vmem:[#allocation2 + $0x48] sm:$0xff] }
 0x1da   : > { %v1822_v53 = vld [vmem:[#allocation2 + $0x90] sm:$0xff] }
 0x1db   : > { %v1821_v14 = vld [vmem:[#allocation2 + $0x70] sm:$0xff] }
 0x1dd   : > { %1829 = vadd.xlane.f32.xlu1 %v1806_v61  ;;  %1825 = vadd.xlane.f32.xlu0 %v1804_v40 }
 0x1de   : > { %1833 = vadd.xlane.f32.xlu2 %v1808_v45 }
 0x1e5   : > { %1837 = vadd.xlane.f32.xlu1 %v1810_v13  ;;  %1835 = vadd.xlane.f32.xlu0 %v1809_v17 }
 0x1e6   : > { %1839 = vadd.xlane.f32.xlu2 %v1811_v38 }
 0x1ed   : > { %1843 = vadd.xlane.f32.xlu1 %v1813_v42  ;;  %1841 = vadd.xlane.f32.xlu0 %v1812_v27 }
 0x1ee   : > { %1845 = vadd.xlane.f32.xlu2 %v1814_v7 }
 0x1f5   : > { %1849 = vadd.xlane.f32.xlu1 %v1816_v47  ;;  %1847 = vadd.xlane.f32.xlu0 %v1815_v35 }
 0x1f6   : > { %1851 = vadd.xlane.f32.xlu2 %v1817_v22 }
 0x1fd   : > { %1855 = vadd.xlane.f32.xlu1 %v1819_v32  ;;  %1853 = vadd.xlane.f32.xlu0 %v1818_v58 }
 0x1fe   : > { %1857 = vadd.xlane.f32.xlu2 %v1820_v10 }
 0x205   : > { %1861 = vadd.xlane.f32.xlu1 %v1822_v53  ;;  %1859 = vadd.xlane.f32.xlu0 %v1821_v14 }
 0x248   : > { %v1828_v41 = vpop.xlane.xlu1 %1827  ;;  %v1824_v0 = vpop.xlane.xlu0 %1823 }
 0x249   : > { %1866 = vst.msk [vmem:[%s2479_s15 + $0x10] sm:$0xff] %vm1863_vm9, %v1828_v41  ;;  %v1832_v31 = vpop.xlane.xlu2 %1831 }
 0x24a   : > { %1864 = vst.msk [vmem:[%s2479_s15] sm:$0xff] %vm1863_vm9, %v1824_v0 }
 0x24b   : > { %1868 = vst.msk [vmem:[%s2479_s15 + $0x20] sm:$0xff] %vm1863_vm9, %v1832_v31 }
 0x250   : > { %v1830_v56 = vpop.xlane.xlu1 %1829  ;;  %v1826_v23 = vpop.xlane.xlu0 %1825 }
 0x251   : > { %1867 = vst.msk [vmem:[%s2479_s15 + $0x18] sm:$0xff] %vm1863_vm9, %v1830_v56  ;;  %v1834_v16 = vpop.xlane.xlu2 %1833 }
 0x252   : > { %1865 = vst.msk [vmem:[%s2479_s15 + $0x8] sm:$0xff] %vm1863_vm9, %v1826_v23 }
 0x253   : > { %1869 = vst.msk [vmem:[%s2479_s15 + $0x28] sm:$0xff] %vm1863_vm9, %v1834_v16 }
 0x258   : > { %v1838_v62 = vpop.xlane.xlu1 %1837  ;;  %v1836_v26 = vpop.xlane.xlu0 %1835 }
 0x259   : > { %1871 = vst.msk [vmem:[%s2479_s15 + $0x38] sm:$0xff] %vm1863_vm9, %v1838_v62  ;;  %v1840_v51 = vpop.xlane.xlu2 %1839 }
 0x25a   : > { %1870 = vst.msk [vmem:[%s2479_s15 + $0x30] sm:$0xff] %vm1863_vm9, %v1836_v26 }
 0x25b   : > { %1872 = vst.msk [vmem:[%s2479_s15 + $0x40] sm:$0xff] %vm1863_vm9, %v1840_v51 }
 0x260   : > { %v1844_v11 = vpop.xlane.xlu1 %1843  ;;  %v1842_v21 = vpop.xlane.xlu0 %1841 }
 0x261   : > { %1874 = vst.msk [vmem:[%s2479_s15 + $0x50] sm:$0xff] %vm1863_vm9, %v1844_v11  ;;  %v1846_v39 = vpop.xlane.xlu2 %1845 }
 0x262   : > { %1873 = vst.msk [vmem:[%s2479_s15 + $0x48] sm:$0xff] %vm1863_vm9, %v1842_v21 }
 0x263   : > { %1875 = vst.msk [vmem:[%s2479_s15 + $0x58] sm:$0xff] %vm1863_vm9, %v1846_v39 }
 0x268   : > { %v1850_v46 = vpop.xlane.xlu1 %1849  ;;  %v1848_v57 = vpop.xlane.xlu0 %1847 }
 0x269   : > { %1877 = vst.msk [vmem:[%s2479_s15 + $0x68] sm:$0xff] %vm1863_vm9, %v1850_v46  ;;  %v1852_v43 = vpop.xlane.xlu2 %1851 }
 0x26a   : > { %1876 = vst.msk [vmem:[%s2479_s15 + $0x60] sm:$0xff] %vm1863_vm9, %v1848_v57 }
 0x26b   : > { %1878 = vst.msk [vmem:[%s2479_s15 + $0x70] sm:$0xff] %vm1863_vm9, %v1852_v43 }
 0x270   : > { %v1856_v25 = vpop.xlane.xlu1 %1855  ;;  %v1854_v6 = vpop.xlane.xlu0 %1853 }
 0x271   : > { %1880 = vst.msk [vmem:[%s2479_s15 + $0x80] sm:$0xff] %vm1863_vm9, %v1856_v25  ;;  %v1858_v50 = vpop.xlane.xlu2 %1857 }
 0x272   : > { %1879 = vst.msk [vmem:[%s2479_s15 + $0x78] sm:$0xff] %vm1863_vm9, %v1854_v6 }
 0x273   : > { %1881 = vst.msk [vmem:[%s2479_s15 + $0x88] sm:$0xff] %vm1863_vm9, %v1858_v50 }
 0x278   : > { %v1862_v59 = vpop.xlane.xlu1 %1861  ;;  %v1860_v30 = vpop.xlane.xlu0 %1859 }
 0x279   : > { %1883 = vst.msk [vmem:[%s2479_s15 + $0x98] sm:$0xff] %vm1863_vm9, %v1862_v59 }
 0x27a   : > { %1882 = vst.msk [vmem:[%s2479_s15 + $0x90] sm:$0xff] %vm1863_vm9, %v1860_v30 }
 0x27b PF: > { %s25_s9 = sadd.s32 1, %s2369_s9   ;;  %s3530_s28 = smov %s2361_s30 }
 0x27c   : > { %p22_p11 = scmp.ge.s32.totalorder %s25_s9, 6   ;;  %s3531_s29 = smov %s2365_s8 }
 0x27d   : > { %s3532_s30 = smov %s3535_s0  ;;  %s3533_s8 = smov %s3539_s10 }
 0x27e   :  { %24 = sbr.rel (!%p22_p11) target bundleno = 9 (0x9), region = 101 }

</bundles_post_ra>
